<compile_context>
chip_gen: v7x
topology: tpu7x:2x2x1
jax: 0.10.0
libtpu: 0.0.40
codegen_flags: <defaults>
</compile_context>

<pallas_src>
import functools

import jax
import jax.numpy as jnp
from jax import lax
from jax.experimental import pallas as pl
from jax.experimental.pallas import tpu as pltpu

EPS = 1e-5
HEADS = 16  # hardcoded by galerkin_core.forward's reshape(B, H*W, 16, -1)


def _round_up(a, b):
    return ((a + b - 1) // b) * b


def galerkin_kernel(x_ref, w_ref, b_ref, lnw_ref, lnb_ref, gsum_ref, mask_ref,
                    o_ref, kvt_acc, q_store, *, midc, hc, hw, n_t):
    M = midc
    f32 = jnp.float32
    t = pl.program_id(1)
    T = x_ref.shape[2]          # token-tile size (static)

    @pl.when(t == 0)
    def _():
        kvt_acc[...] = jnp.zeros_like(kvt_acc)

    x = x_ref[0]                # (C, T) bf16, channels on sublanes, tokens on lanes
    # Fused q/k/v 1x1-conv projection; k|v rows are pre-centered on the host, so
    # qkv[M:] is already (value - per-head mean).
    qkv = jnp.dot(w_ref[...], x, preferred_element_type=f32) + b_ref[...]   # (3M, T) f32

    q = qkv[:M]                 # (M, T)
    cen = qkv[M:]               # (2M, T) == centered [k ; v]

    # Stash this q tile (bf16) for the output phase.
    q_store[t] = q.astype(jnp.bfloat16)

    # Unbiased per-head variance: block-diagonal ones matmul (bf16 operands, f32 acc),
    # replicated across each head's hc rows; eps is added to the *std* (torch variant).
    cen2 = (cen * cen).astype(jnp.bfloat16)
    var = jnp.dot(gsum_ref[...], cen2, preferred_element_type=f32) * (1.0 / (hc - 1.0))
    inv = pl.reciprocal(jnp.sqrt(var) + EPS, approx=True)
    knvn = cen * inv * lnw_ref[...] + lnb_ref[...]                          # (2M, T) f32

    kn = knvn[:M]
    vn = knvn[M:]

    # Zero padded token columns of k so they contribute nothing to K^T V.
    if n_t * T > hw:            # static: padding present on the token axis
        tok = t * T + lax.broadcasted_iota(jnp.int32, (M, T), 1)
        kn = jnp.where(tok < hw, kn, 0.0)

    # Accumulate per-head K^T V over token tiles (contraction over the token axis).
    kvt_acc[...] += lax.dot_general(
        vn.astype(jnp.bfloat16), kn.astype(jnp.bfloat16),
        (((1,), (1,)), ((), ())), preferred_element_type=f32)               # (M, M)

    @pl.when(t == pl.num_programs(1) - 1)
    def _():
        # Per-head block mask with 1/(H*W) folded in, then the output matmul per tile.
        kvt = (kvt_acc[...] * mask_ref[...]).astype(jnp.bfloat16)
        for i in range(n_t):    # static unroll; keeps the f32 intermediate to one tile
            ot = jnp.dot(kvt, q_store[i], preferred_element_type=f32)       # (M, T)
            o_ref[0, :, i * T:(i + 1) * T] = ot.astype(o_ref.dtype)


def galerkin_core_forward(x, packed_params):
    """x: (B, C, H, W) float32 (NCHW, like the PyTorch module). Returns bf16 NCHW."""
    B, C, H, W = x.shape
    M = C                                   # midc
    assert M % HEADS == 0 and M >= 2 * HEADS, "midc must be a multiple of 16 and >= 32"
    hc = M // HEADS
    HW = H * W
    w_fused, b_fused, lnw, lnb = packed_params

    # Token-axis padding to a lane-dense multiple of 128, and tiling for large H*W.
    HWp = _round_up(HW, 128)
    if HWp <= 2048:
        T = HWp                              # single tile (small / moderate images)
    else:
        T = 1024                             # DMA sweet spot; bounds per-step live set
        HWp = _round_up(HWp, T)
    n_t = HWp // T

    # Channel-major layout: a free reshape (no HBM transpose). bf16 halves x traffic.
    x_cm = x.reshape(B, C, HW).astype(jnp.bfloat16)
    if HWp != HW:
        x_cm = jnp.pad(x_cm, ((0, 0), (0, 0), (0, HWp - HW)))

    # Block-diagonal constants, passed as inputs with constant index_maps (DMA'd once).
    g2 = jnp.arange(2 * M) // hc
    gsum = (g2[:, None] == g2[None, :]).astype(jnp.bfloat16)        # (2M, 2M) ones-blocks
    gm = jnp.arange(M) // hc
    mask = jnp.where(gm[:, None] == gm[None, :], 1.0 / HW, 0.0).astype(jnp.float32)

    grid_spec = pltpu.PrefetchScalarGridSpec(
        num_scalar_prefetch=0,
        grid=(B, n_t),
        in_specs=[
            pl.BlockSpec((1, C, T), lambda b, t: (b, 0, t)),         # x (channel-major)
            pl.BlockSpec((3 * M, C), lambda b, t: (0, 0)),           # fused Wqkv (bf16)
            pl.BlockSpec((3 * M, 1), lambda b, t: (0, 0)),           # fused bias (f32)
            pl.BlockSpec((2 * M, 1), lambda b, t: (0, 0)),           # [kln_w ; vln_w]
            pl.BlockSpec((2 * M, 1), lambda b, t: (0, 0)),           # [kln_b ; vln_b]
            pl.BlockSpec((2 * M, 2 * M), lambda b, t: (0, 0)),       # group-sum matrix
            pl.BlockSpec((M, M), lambda b, t: (0, 0)),               # kvt mask (1/HW)
        ],
        out_specs=pl.BlockSpec((1, M, HWp), lambda b, t: (b, 0, 0)),  # resident over t
        scratch_shapes=[
            pltpu.VMEM((M, M), jnp.float32),                          # K^T V accumulator
            pltpu.VMEM((n_t, M, T), jnp.bfloat16),                    # stashed q tiles
        ],
    )

    # Per-generation VMEM limit (~85% of physical capacity, with fallback).
    try:
        vmem_cap = pltpu.get_tpu_info().vmem_capacity_bytes
    except Exception:
        vmem_cap = 128 << 20
    vmem_limit = int(0.85 * vmem_cap)

    out_cm = pl.pallas_call(
        functools.partial(galerkin_kernel, midc=M, hc=hc, hw=HW, n_t=n_t),
        out_shape=jax.ShapeDtypeStruct((B, M, HWp), jnp.bfloat16),
        grid_spec=grid_spec,
        compiler_params=pltpu.CompilerParams(
            dimension_semantics=("parallel", "arbitrary"),
            vmem_limit_bytes=vmem_limit),
    )(x_cm, w_fused, b_fused, lnw, lnb, gsum, mask)

    if HWp != HW:
        out_cm = out_cm[:, :, :HW]
    # Free reshape back to NCHW (channels are already head-major == PyTorch order).
    return out_cm.reshape(B, M, H, W)


def init_params(midc, key):
    """Deterministic parameters matching galerkin_core.__init__ shapes.

    qkv_proj: Conv2d(midc, 3*midc, 1) -> weight (3*midc, midc) (1x1 spatial dims
    squeezed), bias (3*midc,).  kln/vln: (HEADS, headc) weight & bias.
    """
    hc = midc // HEADS
    k1, k2, k3, k4, k5, k6 = jax.random.split(key, 6)
    conv_w = jax.random.normal(k1, (3 * midc, midc), jnp.float32) / jnp.sqrt(midc)
    conv_b = 0.1 * jax.random.normal(k2, (3 * midc,), jnp.float32)
    kln_w = 1.0 + 0.1 * jax.random.normal(k3, (HEADS, hc), jnp.float32)
    kln_b = 0.1 * jax.random.normal(k4, (HEADS, hc), jnp.float32)
    vln_w = 1.0 + 0.1 * jax.random.normal(k5, (HEADS, hc), jnp.float32)
    vln_b = 0.1 * jax.random.normal(k6, (HEADS, hc), jnp.float32)
    return conv_w, conv_b, kln_w, kln_b, vln_w, vln_b


def repack_params(conv_w, conv_b, kln_w, kln_b, vln_w, vln_b, midc):
    """Reorder qkv conv rows into head-major q|k|v blocks, pre-center the k|v rows.

    PyTorch views the 3*midc conv channels as (16, 3*headc) and chunks the last dim
    into q/k/v, so conv channel (h*3*hc + j) -> q[h, j] for j < hc, k[h, j-hc] for
    hc <= j < 2*hc, v otherwise.  The LayerNorm mean subtraction is linear, so it is
    folded into the k/v weights and biases here: W' = (I - block_avg) W, b' likewise.
    """
    hc = midc // HEADS
    M = midc
    base = jnp.arange(HEADS)[:, None] * (3 * hc) + jnp.arange(hc)[None, :]
    q_idx = base.reshape(-1)
    k_idx = (base + hc).reshape(-1)
    v_idx = (base + 2 * hc).reshape(-1)
    order = jnp.concatenate([q_idx, k_idx, v_idx])

    w_r = conv_w[order, :]                     # (3M, C), rows q|k|v head-major, f32
    b_r = conv_b[order]                        # (3M,)

    wq, wkv = w_r[:M], w_r[M:]
    bq, bkv = b_r[:M], b_r[M:]
    wkv_c = wkv.reshape(2 * HEADS, hc, -1)
    wkv_c = (wkv_c - wkv_c.mean(axis=1, keepdims=True)).reshape(2 * M, -1)
    bkv_c = bkv.reshape(2 * HEADS, hc)
    bkv_c = (bkv_c - bkv_c.mean(axis=1, keepdims=True)).reshape(2 * M)

    w_fused = jnp.concatenate([wq, wkv_c], axis=0).astype(jnp.bfloat16)     # (3M, C)
    b_fused = jnp.concatenate([bq, bkv_c])[:, None].astype(jnp.float32)     # (3M, 1)
    lnw = jnp.concatenate([kln_w.reshape(-1),
                           vln_w.reshape(-1)])[:, None].astype(jnp.float32)  # (2M, 1)
    lnb = jnp.concatenate([kln_b.reshape(-1),
                           vln_b.reshape(-1)])[:, None].astype(jnp.float32)  # (2M, 1)
    return w_fused, b_fused, lnw, lnb


def reference_forward(x, conv_w, conv_b, kln_w, kln_b, vln_w, vln_b):
    """Plain-JAX (f32) transcription of galerkin_core.forward, for verification."""
    B, C, H, W = x.shape
    qkv = jnp.einsum('bchw,oc->bhwo', x, conv_w) + conv_b
    qkv = qkv.reshape(B, H * W, 16, -1)
    q, k, v = jnp.split(qkv, 3, axis=-1)

    def ln(t, w, b):
        mean = t.mean(-1, keepdims=True)
        std = t.std(-1, keepdims=True, ddof=1)   # torch .std default: unbiased
        return (t - mean) / (std + EPS) * w + b

    k = ln(k, kln_w, kln_b)
    v = ln(v, vln_w, vln_b)
    q = q.transpose(0, 2, 1, 3)
    k = k.transpose(0, 2, 1, 3)
    v = v.transpose(0, 2, 1, 3)
    kv = jnp.matmul(jnp.swapaxes(k, -2, -1), v) / (H * W)
    out = jnp.matmul(q, kv)
    out = out.transpose(0, 2, 1, 3).reshape(B, H, W, -1).transpose(0, 3, 1, 2)
    return out


if __name__ == "__main__":
    B, midc, H, W = 2, 64, 8, 8  # midc must be a multiple of 16 (hardcoded 16 heads)

    key = jax.random.PRNGKey(0)
    kx, kp = jax.random.split(key)
    x = jax.random.normal(kx, (B, midc, H, W), jnp.float32)

    raw_params = init_params(midc, kp)
    packed = repack_params(*raw_params, midc)

    # Primary (small, lane-padded, single-tile) check.
    out = jax.block_until_ready(galerkin_core_forward(x, packed))
    assert out.shape == (B, midc, H, W), out.shape
    ref = reference_forward(x, *raw_params)
    rel_err = jnp.linalg.norm(out.astype(jnp.float32) - ref) / (jnp.linalg.norm(ref) + 1e-12)
    if not bool(rel_err < 2e-2):
        raise AssertionError(f"kernel/reference mismatch: rel_err={rel_err}")

    # Secondary check: exercises the multi-tile token axis (HW=2304 -> 3 tiles of 1024).
    x2 = jax.random.normal(jax.random.PRNGKey(1), (1, midc, 48, 48), jnp.float32)
    out2 = jax.block_until_ready(galerkin_core_forward(x2, packed))
    ref2 = reference_forward(x2, *raw_params)
    rel_err2 = jnp.linalg.norm(out2.astype(jnp.float32) - ref2) / (jnp.linalg.norm(ref2) + 1e-12)
    if not bool(rel_err2 < 2e-2):
        raise AssertionError(f"tiled kernel/reference mismatch: rel_err={rel_err2}")

    print("KERNEL_OK")
</pallas_src>

<mosaic_0001>
module attributes {stable_mosaic.version = 11 : i64} {
  func.func @galerkin_kernel(%arg0: i32, %arg1: i32, %arg2: memref<1x64x128xbf16, #tpu.memory_space<vmem>>, %arg3: memref<192x64xbf16, #tpu.memory_space<vmem>>, %arg4: memref<192x1xf32, #tpu.memory_space<vmem>>, %arg5: memref<128x1xf32, #tpu.memory_space<vmem>>, %arg6: memref<128x1xf32, #tpu.memory_space<vmem>>, %arg7: memref<128x128xbf16, #tpu.memory_space<vmem>>, %arg8: memref<64x64xf32, #tpu.memory_space<vmem>>, %arg9: memref<1x64x128xbf16, #tpu.memory_space<vmem>>, %arg10: memref<64x64xf32, #tpu.memory_space<vmem>>, %arg11: memref<1x64x128xbf16, #tpu.memory_space<vmem>>) attributes {dimension_semantics = [#tpu.dimension_semantics<parallel>, #tpu.dimension_semantics<arbitrary>], iteration_bounds = array<i64: 2, 1>, scalar_prefetch = 0 : i64, scratch_operands = 2 : i64, tpu.core_type = #tpu.core_type<tc>, window_params = [{transform_indices = @transform_0, window_bounds = array<i64: 1, 64, 128>}, {pipeline_mode = #tpu.pipeline_mode<synchronous>, transform_indices = @transform_1, window_bounds = array<i64: 192, 64>}, {pipeline_mode = #tpu.pipeline_mode<synchronous>, transform_indices = @transform_2, window_bounds = array<i64: 192, 1>}, {pipeline_mode = #tpu.pipeline_mode<synchronous>, transform_indices = @transform_3, window_bounds = array<i64: 128, 1>}, {pipeline_mode = #tpu.pipeline_mode<synchronous>, transform_indices = @transform_4, window_bounds = array<i64: 128, 1>}, {pipeline_mode = #tpu.pipeline_mode<synchronous>, transform_indices = @transform_5, window_bounds = array<i64: 128, 128>}, {pipeline_mode = #tpu.pipeline_mode<synchronous>, transform_indices = @transform_6, window_bounds = array<i64: 64, 64>}, {transform_indices = @transform_7, window_bounds = array<i64: 1, 64, 128>}]} {
    %c0_i32 = arith.constant 0 : i32
    %0 = arith.cmpi eq, %arg1, %c0_i32 : i32
    %1 = arith.extui %0 : i1 to i32
    %c0_i32_0 = arith.constant 0 : i32
    %2 = arith.cmpi ne, %1, %c0_i32_0 : i32
    scf.if %2 {
      %cst_26 = arith.constant 0.000000e+00 : f32
      %53 = vector.broadcast %cst_26 : f32 to vector<64x64xf32>
      %c0_27 = arith.constant 0 : index
      %c0_28 = arith.constant 0 : index
      %54 = vector.load %arg10[%c0_27, %c0_28] : memref<64x64xf32, #tpu.memory_space<vmem>>, vector<64x64xf32>
      tpu.vector_store %arg10[%c0_27, %c0_28], %53 {strides = array<i32>} : memref<64x64xf32, #tpu.memory_space<vmem>>, vector<64x64xf32>,
    } else {
    }
    %c0 = arith.constant 0 : index
    %c0_1 = arith.constant 0 : index
    %c0_2 = arith.constant 0 : index
    %3 = vector.load %arg2[%c0, %c0_1, %c0_2] : memref<1x64x128xbf16, #tpu.memory_space<vmem>>, vector<1x64x128xbf16>
    %4 = vector.shape_cast %3 : vector<1x64x128xbf16> to vector<64x128xbf16>
    %c0_3 = arith.constant 0 : index
    %c0_4 = arith.constant 0 : index
    %5 = vector.load %arg3[%c0_3, %c0_4] : memref<192x64xbf16, #tpu.memory_space<vmem>>, vector<192x64xbf16>
    %cst = arith.constant dense<0.000000e+00> : vector<192x128xf32>
    %6 = tpu.matmul %5, %4, %cst {dimension_numbers = #tpu.dot_dimension_numbers<[1], [0], [0], [1], [0, 0, 1, 1], [], []>} : vector<192x64xbf16>, vector<64x128xbf16>, vector<192x128xf32> -> vector<192x128xf32>
    %c0_5 = arith.constant 0 : index
    %c0_6 = arith.constant 0 : index
    %7 = vector.load %arg4[%c0_5, %c0_6] : memref<192x1xf32, #tpu.memory_space<vmem>>, vector<192x1xf32>
    %8 = vector.broadcast %7 : vector<192x1xf32> to vector<192x128xf32>
    %9 = arith.addf %6, %8 : vector<192x128xf32>
    %10 = vector.extract_strided_slice %9 {offsets = [0, 0], sizes = [64, 128], strides = [1, 1]} : vector<192x128xf32> to vector<64x128xf32>
    %11 = vector.extract_strided_slice %9 {offsets = [64, 0], sizes = [128, 128], strides = [1, 1]} : vector<192x128xf32> to vector<128x128xf32>
    %12 = arith.truncf %10 : vector<64x128xf32> to vector<64x128xbf16>
    %13 = arith.index_cast %arg1 : i32 to index
    %c0_7 = arith.constant 0 : index
    %c0_8 = arith.constant 0 : index
    %14 = vector.load %arg11[%13, %c0_7, %c0_8] : memref<1x64x128xbf16, #tpu.memory_space<vmem>>, vector<1x64x128xbf16>
    %15 = vector.shape_cast %14 : vector<1x64x128xbf16> to vector<64x128xbf16>
    %16 = vector.shape_cast %12 : vector<64x128xbf16> to vector<1x64x128xbf16>
    tpu.vector_store %arg11[%13, %c0_7, %c0_8], %16 {strides = array<i32>} : memref<1x64x128xbf16, #tpu.memory_space<vmem>>, vector<1x64x128xbf16>,
    %17 = arith.mulf %11, %11 : vector<128x128xf32>
    %18 = arith.truncf %17 : vector<128x128xf32> to vector<128x128xbf16>
    %c0_9 = arith.constant 0 : index
    %c0_10 = arith.constant 0 : index
    %19 = vector.load %arg7[%c0_9, %c0_10] : memref<128x128xbf16, #tpu.memory_space<vmem>>, vector<128x128xbf16>
    %cst_11 = arith.constant dense<0.000000e+00> : vector<128x128xf32>
    %20 = tpu.matmul %19, %18, %cst_11 {dimension_numbers = #tpu.dot_dimension_numbers<[1], [0], [0], [1], [0, 0, 1, 1], [], []>} : vector<128x128xbf16>, vector<128x128xbf16>, vector<128x128xf32> -> vector<128x128xf32>
    %cst_12 = arith.constant 0.333333343 : f32
    %21 = vector.broadcast %cst_12 : f32 to vector<128x128xf32>
    %22 = arith.mulf %20, %21 : vector<128x128xf32>
    %23 = math.sqrt %22 : vector<128x128xf32>
    %cst_13 = arith.constant 9.99999974E-6 : f32
    %24 = vector.broadcast %cst_13 : f32 to vector<128x128xf32>
    %25 = arith.addf %23, %24 : vector<128x128xf32>
    %26 = tpu.reciprocal %25 {approx = true} : vector<128x128xf32> -> vector<128x128xf32>
    %27 = arith.mulf %11, %26 : vector<128x128xf32>
    %c0_14 = arith.constant 0 : index
    %c0_15 = arith.constant 0 : index
    %28 = vector.load %arg5[%c0_14, %c0_15] : memref<128x1xf32, #tpu.memory_space<vmem>>, vector<128x1xf32>
    %29 = vector.broadcast %28 : vector<128x1xf32> to vector<128x128xf32>
    %30 = arith.mulf %27, %29 : vector<128x128xf32>
    %c0_16 = arith.constant 0 : index
    %c0_17 = arith.constant 0 : index
    %31 = vector.load %arg6[%c0_16, %c0_17] : memref<128x1xf32, #tpu.memory_space<vmem>>, vector<128x1xf32>
    %32 = vector.broadcast %31 : vector<128x1xf32> to vector<128x128xf32>
    %33 = arith.addf %30, %32 : vector<128x128xf32>
    %34 = vector.extract_strided_slice %33 {offsets = [0, 0], sizes = [64, 128], strides = [1, 1]} : vector<128x128xf32> to vector<64x128xf32>
    %35 = vector.extract_strided_slice %33 {offsets = [64, 0], sizes = [64, 128], strides = [1, 1]} : vector<128x128xf32> to vector<64x128xf32>
    %c128_i32 = arith.constant 128 : i32
    %36 = arith.muli %arg1, %c128_i32 : i32
    %37 = tpu.iota {dimensions = array<i32: 1>} : vector<64x128xi32>
    %38 = vector.broadcast %36 : i32 to vector<64x128xi32>
    %39 = arith.addi %38, %37 : vector<64x128xi32>
    %c64_i32 = arith.constant 64 : i32
    %40 = vector.broadcast %c64_i32 : i32 to vector<64x128xi32>
    %41 = arith.cmpi slt, %39, %40 : vector<64x128xi32>
    %cst_18 = arith.constant 0.000000e+00 : f32
    %42 = vector.broadcast %cst_18 : f32 to vector<64x128xf32>
    %43 = arith.select %41, %34, %42 : vector<64x128xi1>, vector<64x128xf32>
    %c0_19 = arith.constant 0 : index
    %c0_20 = arith.constant 0 : index
    %44 = vector.load %arg10[%c0_19, %c0_20] : memref<64x64xf32, #tpu.memory_space<vmem>>, vector<64x64xf32>
    %45 = arith.truncf %35 : vector<64x128xf32> to vector<64x128xbf16>
    %46 = arith.truncf %43 : vector<64x128xf32> to vector<64x128xbf16>
    %cst_21 = arith.constant dense<0.000000e+00> : vector<64x64xf32>
    %47 = tpu.matmul %45, %46, %cst_21 {dimension_numbers = #tpu.dot_dimension_numbers<[1], [1], [0], [0], [0, 0, 1, 0], [], []>} : vector<64x128xbf16>, vector<64x128xbf16>, vector<64x64xf32> -> vector<64x64xf32>
    %48 = arith.addf %44, %47 : vector<64x64xf32>
    %c0_22 = arith.constant 0 : index
    %c0_23 = arith.constant 0 : index
    %49 = vector.load %arg10[%c0_22, %c0_23] : memref<64x64xf32, #tpu.memory_space<vmem>>, vector<64x64xf32>
    tpu.vector_store %arg10[%c0_22, %c0_23], %48 {strides = array<i32>} : memref<64x64xf32, #tpu.memory_space<vmem>>, vector<64x64xf32>,
    %c0_i32_24 = arith.constant 0 : i32
    %50 = arith.cmpi eq, %arg1, %c0_i32_24 : i32
    %51 = arith.extui %50 : i1 to i32
    %c0_i32_25 = arith.constant 0 : i32
    %52 = arith.cmpi ne, %51, %c0_i32_25 : i32
    scf.if %52 {
      %c0_26 = arith.constant 0 : index
      %c0_27 = arith.constant 0 : index
      %53 = vector.load %arg10[%c0_26, %c0_27] : memref<64x64xf32, #tpu.memory_space<vmem>>, vector<64x64xf32>
      %c0_28 = arith.constant 0 : index
      %c0_29 = arith.constant 0 : index
      %54 = vector.load %arg8[%c0_28, %c0_29] : memref<64x64xf32, #tpu.memory_space<vmem>>, vector<64x64xf32>
      %55 = arith.mulf %53, %54 : vector<64x64xf32>
      %56 = arith.truncf %55 : vector<64x64xf32> to vector<64x64xbf16>
      %c0_30 = arith.constant 0 : index
      %c0_31 = arith.constant 0 : index
      %c0_32 = arith.constant 0 : index
      %57 = vector.load %arg11[%c0_30, %c0_31, %c0_32] : memref<1x64x128xbf16, #tpu.memory_space<vmem>>, vector<1x64x128xbf16>
      %58 = vector.shape_cast %57 : vector<1x64x128xbf16> to vector<64x128xbf16>
      %cst_33 = arith.constant dense<0.000000e+00> : vector<64x128xf32>
      %59 = tpu.matmul %56, %58, %cst_33 {dimension_numbers = #tpu.dot_dimension_numbers<[1], [0], [0], [1], [0, 0, 1, 1], [], []>} : vector<64x64xbf16>, vector<64x128xbf16>, vector<64x128xf32> -> vector<64x128xf32>
      %60 = arith.truncf %59 : vector<64x128xf32> to vector<64x128xbf16>
      %c0_34 = arith.constant 0 : index
      %c0_35 = arith.constant 0 : index
      %c0_36 = arith.constant 0 : index
      %61 = vector.load %arg9[%c0_34, %c0_35, %c0_36] : memref<1x64x128xbf16, #tpu.memory_space<vmem>>, vector<1x64x128xbf16>
      %62 = vector.shape_cast %61 : vector<1x64x128xbf16> to vector<64x128xbf16>
      %63 = vector.shape_cast %60 : vector<64x128xbf16> to vector<1x64x128xbf16>
      tpu.vector_store %arg9[%c0_34, %c0_35, %c0_36], %63 {strides = array<i32>} : memref<1x64x128xbf16, #tpu.memory_space<vmem>>, vector<1x64x128xbf16>,
    } else {
    }
    return
  }
  func.func @transform_0(%arg0: i32, %arg1: i32) -> (i32, i32, i32) {
    %c0_i32 = arith.constant 0 : i32
    %c0_i32_0 = arith.constant 0 : i32
    return %arg0, %c0_i32, %arg1 : i32, i32, i32
  }
  func.func @transform_1(%arg0: i32, %arg1: i32) -> (i32, i32) {
    %c0_i32 = arith.constant 0 : i32
    %c0_i32_0 = arith.constant 0 : i32
    %c0_i32_1 = arith.constant 0 : i32
    return %c0_i32, %c0_i32_0 : i32, i32
  }
  func.func @transform_2(%arg0: i32, %arg1: i32) -> (i32, i32) {
    %c0_i32 = arith.constant 0 : i32
    %c0_i32_0 = arith.constant 0 : i32
    %c0_i32_1 = arith.constant 0 : i32
    return %c0_i32, %c0_i32_0 : i32, i32
  }
  func.func @transform_3(%arg0: i32, %arg1: i32) -> (i32, i32) {
    %c0_i32 = arith.constant 0 : i32
    %c0_i32_0 = arith.constant 0 : i32
    %c0_i32_1 = arith.constant 0 : i32
    return %c0_i32, %c0_i32_0 : i32, i32
  }
  func.func @transform_4(%arg0: i32, %arg1: i32) -> (i32, i32) {
    %c0_i32 = arith.constant 0 : i32
    %c0_i32_0 = arith.constant 0 : i32
    %c0_i32_1 = arith.constant 0 : i32
    return %c0_i32, %c0_i32_0 : i32, i32
  }
  func.func @transform_5(%arg0: i32, %arg1: i32) -> (i32, i32) {
    %c0_i32 = arith.constant 0 : i32
    %c0_i32_0 = arith.constant 0 : i32
    %c0_i32_1 = arith.constant 0 : i32
    return %c0_i32, %c0_i32_0 : i32, i32
  }
  func.func @transform_6(%arg0: i32, %arg1: i32) -> (i32, i32) {
    %c0_i32 = arith.constant 0 : i32
    %c0_i32_0 = arith.constant 0 : i32
    %c0_i32_1 = arith.constant 0 : i32
    return %c0_i32, %c0_i32_0 : i32, i32
  }
  func.func @transform_7(%arg0: i32, %arg1: i32) -> (i32, i32, i32) {
    %c0_i32 = arith.constant 0 : i32
    %c0_i32_0 = arith.constant 0 : i32
    %c0_i32_1 = arith.constant 0 : i32
    return %arg0, %c0_i32, %c0_i32_0 : i32, i32, i32
  }
}

</mosaic_0001>

<bundles_post_ra>
// kernel: tpu_custom_call.1
= control target key start
LH: loop header
LB: loop body
LE: loop exit
PB: predicated region body
PF: predicated region fallthrough
CT: control target
= control target key end

     0   :  { %s3515_s0 = inlined_call_operand.hbm [shape: bf16[2,64,128], index: 0, kind: input, shape index: {}]   ;;  %s3516_s1 = inlined_call_operand.hbm [shape: bf16[192,64], index: 1, kind: input, shape index: {}]   ;;  %s3517_s2 = inlined_call_operand.hbm [shape: f32[192,1], index: 2, kind: input, shape index: {}]   ;;  %s3518_s3 = inlined_call_operand.hbm [shape: f32[128,1], index: 3, kind: input, shape index: {}]   ;;  %s3519_s4 = inlined_call_operand.hbm [shape: f32[128,1], index: 4, kind: input, shape index: {}]   ;;  %s3520_s5 = inlined_call_operand.hbm [shape: bf16[128,128], index: 5, kind: input, shape index: {}]   ;;  %s3521_s6 = inlined_call_operand.hbm [shape: f32[64,64], index: 6, kind: input, shape index: {}]   ;;  %s3522_s7 = inlined_call_operand.hbm [shape: bf16[2,64,128], index: 7, kind: output, shape index: {}]  }
   0x1   :  { %3537 = sst [smem:[#allocation36_spill]] %s3522_s7 }
   0x2   :  { %12 = vsyncpa [#allocation5], 0 }
   0x3   :  { %14 = vsyncpa [#allocation5 + $0x1], 0 }
   0x4   :  { %15 = vsyncpa [#allocation8], 0 }
   0x5   :  { %16 = vsyncpa [#allocation11], 0 }
   0x6   :  { %17 = vsyncpa [#allocation14], 0 }
   0x7   :  { %18 = vsyncpa [#allocation6], 0 }
   0x8   :  { %20 = vsyncpa [#allocation6 + $0x1], 0  ;;  %s2689_s24 = smov 0   ;;  %s2691_s25 = smov 0  }
   0x9   :  { %s2693_s26 = smov 0   ;;  %s2695_s27 = smov 0  }
   0xa   :  { %s2697_s28 = smov 0   ;;  %s2699_s29 = smov 0  }
   0xb LB: > { %3538 = sst [smem:[#allocation22_spill]] %s2623_s27  ;;  %s3526_s30 = sadd.s32 4294967295, %s2631_s29   ;;  %s2631_s29 = sphi %s2699_s29, %s26_s29   ;;  %s2627_s28 = sphi %s2697_s28, %s3593_s28   ;;  %s2623_s27 = sphi %s2695_s27, %s3592_s27   ;;  %s2619_s26 = sphi %s2693_s26, %s3591_s26   ;;  %s2615_s25 = sphi %s2691_s25, %s3590_s25   ;;  %s2611_s24 = sphi %s2689_s24, %s3589_s24  }
   0xc   : > { %p1856_p0 = scmp.ge.s32.totalorder %s2631_s29, 1  ;;  %p2723_p1 = scmp.eq.s32.totalorder %s3526_s30, 0 }
   0xd   : > { %p223_p2 = scmp.lt.s32.totalorder %s2631_s29, 3  ;;  %s2633_s10 = smov [#allocation7]  }
   0xe   : > { %s3539_s8 = scalar_select %p2723_p1, 1, 0 }
   0xf   : > { %p2728_p3 = pnand %p1856_p0, %p223_p2  ;;  %s235_s11 = sshll.u32 %s2633_s10, 4  ;;  %s236_s11 = int_to_ptr.vmem [resolvable:$true] %s235_s11 }
  0x10   : > { %s2634_s13 = smov [#allocation10]   ;;  %s2339_s17 = scalar_lea.hbm %s3516_s1, 1536 }
  0x11   : > { %s3540_s9 = scalar_select %p2728_p3, 1, 0 }
  0x12   : > { %p2146_p4 = pneg %p2728_p3  ;;  %s261_s14 = sshll.u32 %s2634_s13, 4  ;;  %s262_s14 = int_to_ptr.vmem [resolvable:$true] %s261_s14 }
  0x13   : > { %p2340_p7 = scmp.ne.s32.totalorder %s3516_s1, %s2339_s17  ;;  %p2346_p11 = scmp.lt.u32.totalorder %s2339_s17, %s3516_s1 }
  0x14   : > { %p2737_p6 = pnand %p2146_p4, %p2723_p1 }
  0x16   : > { %p2749_p8 = pneg %p2737_p6 }
  0x18   : > { %p2342_p9 = pnand %p2749_p8, %p2340_p7 }
  0x1a   : > { %p2343_p10 = pneg %p2342_p9 }
  0x1c   : > { %p2348_p12 = pnand %p2346_p11, %p2343_p10 }
  0x1e   : > { %2351 = shalt.err (!%p2348_p12)
}
  0x1f   : > { %s2352_s23 = scalar_lea.vmem %s236_s11, 1536  ;;  %p2360_p4 = scmp.lt.s32.totalorder %s236_s11, %s236_s11 }
  0x20   : > { %p2353_p13 = scmp.ne.s32.totalorder %s236_s11, %s2352_s23  ;;  %p2361_p5 = scmp.lt.s32.totalorder %s2352_s23, %s2352_s23 }
  0x22   : > { %p2355_p0 = pnand %p2353_p13, %p2749_p8  ;;  %p2362_p3 = por %p2361_p5, %p2360_p4 }
  0x24   : > { %p2356_p2 = pneg %p2355_p0 }
  0x26   : > { %p2363_p1 = pnand %p2362_p3, %p2356_p2 }
  0x28   : > { %2366 = shalt.err (!%p2363_p1)
}
  0x29   : > { %s3532_s10 = smov 64   ;;  %s2636_s13 = smov 4  }
  0x2a   : > { %2149 = dma.hbm_to_vmem [thread:$0]  (!%p2737_p6), %s3516_s1, 1536, %s236_s11, [#allocation8], %s3532_s10, %s3532_s10, %s2636_s13  }
  0x2b   : > { %s2637_s17 = smov [#allocation13]   ;;  %s2367_s22 = scalar_lea.hbm %s3518_s3, 2048 }
  0x2c   : > { %s287_s18 = sshll.u32 %s2637_s17, 4  ;;  %p2368_p1 = scmp.ne.s32.totalorder %s3518_s3, %s2367_s22  ;;  %s288_s18 = int_to_ptr.vmem [resolvable:$true] %s287_s18 }
  0x2d   : > { %p2374_p7 = scmp.lt.u32.totalorder %s2367_s22, %s3518_s3 }
  0x2e   : > { %p2370_p3 = pnand %p2368_p1, %p2749_p8 }
  0x30   : > { %p2371_p5 = pneg %p2370_p3 }
  0x32   : > { %p2376_p9 = pnand %p2374_p7, %p2371_p5 }
  0x34   : > { %2379 = shalt.err (!%p2376_p9)
}
  0x35   : > { %s2380_s11 = scalar_lea.vmem %s262_s14, 2048  ;;  %p2388_p13 = scmp.lt.s32.totalorder %s262_s14, %s262_s14 }
  0x36   : > { %p2381_p10 = scmp.ne.s32.totalorder %s262_s14, %s2380_s11  ;;  %p2389_p0 = scmp.lt.s32.totalorder %s2380_s11, %s2380_s11 }
  0x38   : > { %p2383_p11 = pnand %p2381_p10, %p2749_p8  ;;  %p2390_p2 = por %p2389_p0, %p2388_p13 }
  0x3a   : > { %p2384_p12 = pneg %p2383_p11 }
  0x3c   : > { %p2391_p4 = pnand %p2390_p2, %p2384_p12 }
  0x3e   : > { %2394 = shalt.err (!%p2391_p4)
}
  0x3f   : > { %s3528_s30 = smov 128   ;;  %s3530_s15 = smov 8  }
  0x40   : > { %2155 = dma.hbm_to_vmem [thread:$0]  (!%p2737_p6), %s3518_s3, 2048, %s262_s14, [#allocation11], %s3528_s30, %s3528_s30, %s3530_s15  }
  0x41   : > { %s2395_s19 = scalar_lea.hbm %s3520_s5, 1024 }
  0x42   : > { %p2396_p1 = scmp.ne.s32.totalorder %s3520_s5, %s2395_s19  ;;  %p2402_p7 = scmp.lt.u32.totalorder %s2395_s19, %s3520_s5 }
  0x44   : > { %p2398_p3 = pnand %p2396_p1, %p2749_p8 }
  0x46   : > { %p2399_p5 = pneg %p2398_p3 }
  0x48   : > { %p2404_p9 = pnand %p2402_p7, %p2399_p5 }
  0x4a   : > { %2407 = shalt.err (!%p2404_p9)
}
  0x4b   : > { %s2408_s7 = scalar_lea.vmem %s288_s18, 1024  ;;  %p2416_p13 = scmp.lt.s32.totalorder %s288_s18, %s288_s18 }
  0x4c   : > { %p2409_p10 = scmp.ne.s32.totalorder %s288_s18, %s2408_s7  ;;  %p2417_p0 = scmp.lt.s32.totalorder %s2408_s7, %s2408_s7 }
  0x4e   : > { %p2411_p11 = pnand %p2409_p10, %p2749_p8  ;;  %p2418_p2 = por %p2417_p0, %p2416_p13 }
  0x50   : > { %p2412_p12 = pneg %p2411_p11 }
  0x52   : > { %p2419_p4 = pnand %p2418_p2, %p2412_p12 }
  0x54   : > { %2422 = shalt.err (!%p2419_p4)
}
  0x55   : > { %2161 = dma.hbm_to_vmem [thread:$0]  (!%p2737_p6), %s3520_s5, 1024, %s288_s18, [#allocation14], %s3532_s10, %s3532_s10, %s2636_s13  }
  0x56   : > { %s2640_s16 = smov [#allocation9]   ;;  %s2641_s19 = smov [#allocation12]  }
  0x57   : > { %s248_s17 = sshll.u32 %s2640_s16, 4  ;;  %s274_s21 = sshll.u32 %s2641_s19, 4  ;;  %s249_s17 = int_to_ptr.vmem [resolvable:$true] %s248_s17  ;;  %s275_s21 = int_to_ptr.vmem [resolvable:$true] %s274_s21 }
  0x58   : > { %s2423_s11 = scalar_lea.hbm %s3517_s2, 3072 }
  0x59   : > { %p2424_p1 = scmp.ne.s32.totalorder %s3517_s2, %s2423_s11  ;;  %p2430_p7 = scmp.lt.u32.totalorder %s2423_s11, %s3517_s2 }
  0x5b   : > { %p2426_p3 = pnand %p2424_p1, %p2749_p8 }
  0x5d   : > { %p2427_p5 = pneg %p2426_p3 }
  0x5f   : > { %p2432_p9 = pnand %p2430_p7, %p2427_p5 }
  0x61   : > { %2435 = shalt.err (!%p2432_p9)
}
  0x62   : > { %s2436_s18 = scalar_lea.vmem %s249_s17, 3072  ;;  %p2444_p13 = scmp.lt.s32.totalorder %s249_s17, %s249_s17 }
  0x63   : > { %p2437_p10 = scmp.ne.s32.totalorder %s249_s17, %s2436_s18  ;;  %p2445_p0 = scmp.lt.s32.totalorder %s2436_s18, %s2436_s18 }
  0x65   : > { %p2439_p11 = pnand %p2437_p10, %p2749_p8  ;;  %p2446_p2 = por %p2445_p0, %p2444_p13 }
  0x67   : > { %p2440_p12 = pneg %p2439_p11 }
  0x69   : > { %p2447_p4 = pnand %p2446_p2, %p2440_p12 }
  0x6b   : > { %2450 = shalt.err (!%p2447_p4)
}
  0x6c   : > { %s3543_s30 = smov 8   ;;  %s3544_s27 = smov 128  }
  0x6d   : > { %2152 = dma.hbm_to_vmem [thread:$0]  (!%p2737_p6), %s3517_s2, 3072, %s249_s17, [#allocation8], %s3544_s27, %s3544_s27, %s3543_s30  }
  0x6e   : > { %s2451_s23 = scalar_lea.hbm %s3519_s4, 2048 }
  0x6f   : > { %p2452_p1 = scmp.ne.s32.totalorder %s3519_s4, %s2451_s23  ;;  %p2458_p7 = scmp.lt.u32.totalorder %s2451_s23, %s3519_s4 }
  0x71   : > { %p2454_p3 = pnand %p2452_p1, %p2749_p8 }
  0x73   : > { %p2455_p5 = pneg %p2454_p3 }
  0x75   : > { %p2460_p9 = pnand %p2458_p7, %p2455_p5 }
  0x77   : > { %2463 = shalt.err (!%p2460_p9)
}
  0x78   : > { %s2464_s15 = scalar_lea.vmem %s275_s21, 2048  ;;  %p2472_p13 = scmp.lt.s32.totalorder %s275_s21, %s275_s21 }
  0x79   : > { %p2465_p10 = scmp.ne.s32.totalorder %s275_s21, %s2464_s15  ;;  %p2473_p0 = scmp.lt.s32.totalorder %s2464_s15, %s2464_s15 }
  0x7b   : > { %p2467_p11 = pnand %p2465_p10, %p2749_p8  ;;  %p2474_p2 = por %p2473_p0, %p2472_p13 }
  0x7d   : > { %p2468_p12 = pneg %p2467_p11 }
  0x7f   : > { %p2475_p4 = pnand %p2474_p2, %p2468_p12 }
  0x81   : > { %2478 = shalt.err (!%p2475_p4)
}
  0x82   : > { %2158 = dma.hbm_to_vmem [thread:$0]  (!%p2737_p6), %s3519_s4, 2048, %s275_s21, [#allocation11], %s3544_s27, %s3544_s27, %s3543_s30  }
  0x83   : > { %s2642_s19 = smov [#allocation15]   ;;  %s2479_s7 = scalar_lea.hbm %s3521_s6, 1024 }
  0x84   : > { %s300_s22 = sshll.u32 %s2642_s19, 4  ;;  %p2480_p1 = scmp.ne.s32.totalorder %s3521_s6, %s2479_s7  ;;  %s301_s22 = int_to_ptr.vmem [resolvable:$true] %s300_s22 }
  0x85   : > { %p2486_p7 = scmp.lt.u32.totalorder %s2479_s7, %s3521_s6 }
  0x86   : > { %p2482_p3 = pnand %p2480_p1, %p2749_p8 }
  0x88   : > { %p2483_p5 = pneg %p2482_p3 }
  0x8a   : > { %p2488_p9 = pnand %p2486_p7, %p2483_p5 }
  0x8c   : > { %2491 = shalt.err (!%p2488_p9)
}
  0x8d   : > { %s2492_s21 = scalar_lea.vmem %s301_s22, 1024  ;;  %p2500_p13 = scmp.lt.s32.totalorder %s301_s22, %s301_s22 }
  0x8e   : > { %p2493_p10 = scmp.ne.s32.totalorder %s301_s22, %s2492_s21  ;;  %p2501_p0 = scmp.lt.s32.totalorder %s2492_s21, %s2492_s21 }
  0x90   : > { %p2495_p11 = pnand %p2493_p10, %p2749_p8  ;;  %p2502_p2 = por %p2501_p0, %p2500_p13 }
  0x92   : > { %p2496_p12 = pneg %p2495_p11 }
  0x94   : > { %p2503_p4 = pnand %p2502_p2, %p2496_p12 }
  0x96   : > { %2506 = shalt.err (!%p2503_p4)
}
  0x97   : > { %2164 = dma.hbm_to_vmem [thread:$0]  (!%p2737_p6), %s3521_s6, 1024, %s301_s22, [#allocation14], %s3544_s27, %s3544_s27, %s3543_s30  }
  0x98   : > { %s1855_s12 = sadd.s32 4294967294, %s2631_s29   ;;  %s38_s20 = sadd.s32 1, %s2627_s28 }
  0x99   : > { %p40_p8 = scmp.ge.s32.totalorder %s38_s20, 2  ;;  %s47_s16 = sadd.s32 1, %s2619_s26 }
  0x9a   : > { %p54_p1 = scmp.ne.s32.totalorder %s2619_s26, %s2615_s25  ;;  %p55_p3 = scmp.eq.s32.totalorder %s2631_s29, 0 }
  0x9b   : > { %s3595_s20 = smov (%p40_p8, %s38_s20), 0  ;;  %p60_p7 = scmp.ne.s32.totalorder %s2615_s25, %s2611_s24 }
  0x9c   : > { %p2881_p5 = por %p55_p3, %p54_p1  ;;  %s42_s30 = ssub.s32 %s2627_s28, %s3595_s20 }
  0x9d   : > { %s3546_s27 = sadd.s32 4294967295, %s2631_s29   ;;  %p45_p9 = scmp.eq.s32.totalorder %s42_s30, 0 }
  0x9e   : > { %p210_p6 = scmp.eq.s32.totalorder %s3546_s27, 1  ;;  %p3547_p10 = scmp.ne.s32.totalorder %s3539_s8, 0 }
  0x9f   : > { %p216_p13 = scmp.eq.s32.totalorder %s1855_s12, 1  ;;  %p2179_p2 = scmp.lt.s32.totalorder %s2631_s29, 2 }
  0xa0   : > { %p2893_p11 = por %p3547_p10, %p60_p7  ;;  %p2897_p12 = por %p210_p6, %p54_p1 }
  0xa1   : > { %s2902_s11 = scalar_select %p45_p9, %s2619_s26, %s47_s16  }
  0xa2   : > { %s3549_s23 = scalar_select %p2897_p12, 1, 0 }
  0xa3   : > { %p2904_p0 = por %p216_p13, %p60_p7  ;;  %s314_s14 = sand.u32 1, %s2619_s26  }
  0xa4   : > { %s1941_s18 = sshll.u32 %s2627_s28, 9  ;;  %s1864_s15 = sshll.u32 %s314_s14, 5 }
  0xa5   : > { %s3550_s7 = scalar_select %p2904_p0, 1, 0 }
  0xa6   : > { %s2914_s17 = scalar_lea.hbm %s3515_s0, %s1941_s18  ;;  %s318_s12 = scalar_lea.vmem [#allocation4], %s1864_s15 }
  0xa7   : > { %s326_s16 = sshll.u32 %s318_s12, 4  ;;  %p2918_p4 = pnand %p2179_p2, %p2881_p5  ;;  %s2922_s16 = int_to_ptr.vmem [resolvable:$true] %s326_s16 }
  0xa8   : > { %s2924_s27 = scalar_lea.sflag [#allocation5], %s314_s14  ;;  %s2507_s21 = scalar_lea.hbm %s2914_s17, 512 }
  0xa9   : > { %p2508_p8 = scmp.ne.s32.totalorder %s2914_s17, %s2507_s21  ;;  %p2509_p1 = pneg %p2918_p4 }
  0xaa   : > { %s2512_s15 = scalar_lea.hbm %s3515_s0, 1024  ;;  %p2513_p5 = scmp.lt.u32.totalorder %s2914_s17, %s3515_s0 }
  0xab   : > { %p2510_p3 = pnand %p2509_p1, %p2508_p8  ;;  %p2514_p6 = scmp.lt.u32.totalorder %s2512_s15, %s2507_s21 }
  0xac   : > { %p2516_p10 = scmp.lt.u32.totalorder %s2507_s21, %s2914_s17 }
  0xad   : > { %p2511_p7 = pneg %p2510_p3  ;;  %p2515_p9 = por %p2514_p6, %p2513_p5 }
  0xaf   : > { %p2517_p13 = por %p2516_p10, %p2515_p9 }
  0xb1   : > { %p2518_p2 = pnand %p2517_p13, %p2511_p7 }
  0xb3   : > { %2521 = shalt.err (!%p2518_p2)
}
  0xb4   : > { %s2522_s14 = scalar_lea.vmem %s2922_s16, 512  ;;  %s2643_s18 = smov [#allocation4]  }
  0xb5   : > { %p2523_p8 = scmp.ne.s32.totalorder %s2922_s16, %s2522_s14  ;;  %s2527_s19 = sshll.u32 %s2643_s18, 4  ;;  %s2528_s19 = int_to_ptr.vmem [resolvable:$false] %s2527_s19 }
  0xb6   : > { %s2529_s10 = scalar_lea.vmem %s2528_s19, 1024  ;;  %p2530_p12 = scmp.lt.s32.totalorder %s2922_s16, %s2528_s19 }
  0xb7   : > { %p2525_p3 = pnand %p2523_p8, %p2509_p1  ;;  %p2531_p5 = scmp.lt.s32.totalorder %s2529_s10, %s2522_s14 }
  0xb9   : > { %p2526_p0 = pneg %p2525_p3  ;;  %p2532_p6 = por %p2531_p5, %p2530_p12 }
  0xbb   : > { %p2533_p9 = pnand %p2532_p6, %p2526_p0 }
  0xbd   : > { %2536 = shalt.err (!%p2533_p9)
}
  0xbe   : > { %s3552_s21 = smov 64   ;;  %p3553_p1 = scmp.ne.s32.totalorder %s3540_s9, 0 }
  0xbf   : > { %2168 = dma.hbm_to_vmem [thread:$0]  (!%p2918_p4), %s2914_s17, 512, %s2922_s16, %s2924_s27, %s3552_s21, %s3552_s21, %s2636_s13  }
  0xc0   : > { %338 = sbr.rel (%p3553_p1) target bundleno = 1259 (0x4eb), region = 48 }
  0xc7   : > { %s2958_s15 = sand.u32 1, %s2615_s25  }
  0xc8   : > { %s1868_s12 = sshll.u32 %s2958_s15, 5  ;;  %s341_s14 = scalar_lea.sflag [#allocation5], %s2958_s15 }
  0xc9   : > { %s2964_s30 = scalar_lea.vmem [#allocation4], %s1868_s12 }
  0xca   : > { %2590 = dma.done.wait (%p2893_p11), %s341_s14, 512  }
  0xcb   : > { %2592 = vsyncadd (%p2893_p11), %s341_s14, 4294966784  ;;  %p3554_p12 = scmp.ne.s32.totalorder %s3539_s8, 0 }
  0xcd   : > { %2594 = dma.done.wait (%p3554_p12), [#allocation8], 4608  }
  0xce   : > { %2596 = vsyncadd (%p3554_p12), [#allocation8], 4294962688 }
  0xcf   : > { %2598 = dma.done.wait (%p3554_p12), [#allocation11], 4096  }
  0xd0   : > { %2600 = vsyncadd (%p3554_p12), [#allocation11], 4294963200 }
  0xd1   : > { %2602 = dma.done.wait (%p3554_p12), [#allocation14], 2048  }
  0xd2   : > { %2604 = vsyncadd (%p3554_p12), [#allocation14], 4294965248  ;;  %v2644_v0 = vmov 0   ;;  %v453_v1 = vld [vmem:[#allocation9 + $0x40] sm:$0xff]  ;;  %v455_v3 = vld [vmem:[#allocation9 + $0x50] sm:$0xff]  ;;  %vm404_vm0 = vcmask 523264  }
  0xd3   : > { %2249 = vset.pattern.permute.xlu0 %v2644_v0  ;;  %2250 = vset.pattern.permute.xlu1 %v2644_v0  ;;  %v2251_v2 = vld [vmem:[%s2964_s30] sm:$0xff]   ;;  %v454_v4 = vld [vmem:[#allocation9 + $0x48] sm:$0xff]  ;;  %v456_v6 = vld [vmem:[#allocation9 + $0x58] sm:$0xff]  ;;  %s3583_s8 = sld [smem:[#allocation22_spill]]  ;;  %s398_s9 = scalar_lea.vmem [#allocation16], %s1868_s12 }
  0xd4   : > { %511 = vperm.xlu0 %2249, %v453_v1   ;;  %521 = vperm.xlu1 %2250, %v455_v3   ;;  %v2252_v5 = vld [vmem:[%s2964_s30 + $0x8] sm:$0xff]   ;;  %v2253_v7 = vld [vmem:[%s2964_s30 + $0x10] sm:$0xff]   ;;  %v457_v8 = vld [vmem:[#allocation9 + $0x60] sm:$0xff]  ;;  %s1712_s13 = sshll.u32 %s398_s9, 4  ;;  %s3584_s27 = sld [smem:[#allocation36_spill]]  ;;  %s3461_s13 = int_to_ptr.vmem [resolvable:$true] %s1712_s13 }
  0xd5   : > { %2022 = vmatprep.subr.bf16.mxu0 %v2251_v2  ;;  %v458_v9 = vld [vmem:[#allocation9 + $0x68] sm:$0xff]  ;;  %v2255_v10 = vld [vmem:[#allocation7] sm:$0xff]   ;;  %v2254_v11 = vld [vmem:[%s2964_s30 + $0x18] sm:$0xff]   ;;  %s1699_s10 = scalar_lea.sflag [#allocation6], %s2958_s15  ;;  %s2537_s21 = scalar_lea.vmem %s3461_s13, 512 }
  0xd6   : > { %2023 = vmatpush3.bf16.msra.mxu0 %v2251_v2  ;;  %v459_v12 = vld [vmem:[#allocation9 + $0x70] sm:$0xff]  ;;  %2030 = vmatprep.mubr.msk.bf16.mxu0 %vm404_vm0, %v2255_v10  ;;  %v460_v13 = vld [vmem:[#allocation9 + $0x78] sm:$0xff]  ;;  %v461_v14 = vld [vmem:[#allocation9 + $0x80] sm:$0xff]  ;;  %p2538_p11 = scmp.ne.s32.totalorder %s3461_s13, %s2537_s21  ;;  %p3586_p0 = scmp.ne.s32.totalorder %s3549_s23, 0 }
  0xd7   : > { %2024 = vmatprep.subr.bf16.mxu0 %v2252_v5  ;;  %v2256_v15 = vld [vmem:[#allocation7 + $0x8] sm:$0xff]   ;;  %v2257_v17 = vld [vmem:[#allocation7 + $0x10] sm:$0xff]   ;;  %v464_v19 = vld [vmem:[#allocation9 + $0x98] sm:$0xff]  ;;  %s2646_s12 = smov [#allocation16]  }
  0xd8   : > { %516 = vperm.xlu0 %2249, %v454_v4   ;;  %526 = vperm.xlu1 %2250, %v456_v6   ;;  %v462_v16 = vld [vmem:[#allocation9 + $0x88] sm:$0xff]  ;;  %v463_v18 = vld [vmem:[#allocation9 + $0x90] sm:$0xff]  ;;  %v465_v20 = vld [vmem:[#allocation9 + $0xa0] sm:$0xff]  ;;  %p2539_p4 = pnand %p2538_p11, %p3586_p0  ;;  %s2541_s14 = sshll.u32 %s2646_s12, 4  ;;  %s2542_s14 = int_to_ptr.vmem [resolvable:$false] %s2541_s14 }
  0xd9   : > { %v2258_v21 = vld [vmem:[#allocation7 + $0x18] sm:$0xff]   ;;  %v466_v22 = vld [vmem:[#allocation9 + $0xa8] sm:$0xff]  ;;  %v2259_v23 = vld [vmem:[#allocation7 + $0x20] sm:$0xff]   ;;  %s1950_s22 = sshll.u32 %s3583_s8, 9  ;;  %s2543_s30 = scalar_lea.vmem %s2542_s14, 1024 }
  0xda   : > { %2025 = vmatpush3.bf16.msra.mxu0 %v2252_v5  ;;  %v467_v24 = vld [vmem:[#allocation9 + $0xb0] sm:$0xff]  ;;  %v468_v25 = vld [vmem:[#allocation9 + $0xb8] sm:$0xff]  ;;  %v1211_v26 = vld [vmem:[#allocation10] sm:$0xff]  ;;  %s3585_s18 = smov %s3584_s27  ;;  %s3466_s19 = scalar_lea.hbm %s3584_s27, %s1950_s22 }
  0xdb   : > { %2026 = vmatprep.subr.bf16.mxu0 %v2253_v7  ;;  %v2260_v27 = vld [vmem:[#allocation7 + $0x28] sm:$0xff]   ;;  %v2261_v29 = vld [vmem:[#allocation7 + $0x30] sm:$0xff]   ;;  %v1323_v30 = vld [vmem:[#allocation12] sm:$0xff]  ;;  %p2540_p7 = pneg %p2539_p4  ;;  %p2544_p10 = scmp.lt.s32.totalorder %s3461_s13, %s2542_s14 }
  0xdc   : > { %531 = vperm.xlu0 %2249, %v457_v8   ;;  %536 = vperm.xlu1 %2250, %v458_v9   ;;  %v1212_v28 = vld [vmem:[#allocation10 + $0x8] sm:$0xff]  ;;  %v1213_v32 = vld [vmem:[#allocation10 + $0x10] sm:$0xff]  ;;  %v2262_v33 = vld [vmem:[#allocation7 + $0x38] sm:$0xff]   ;;  %p2545_p13 = scmp.lt.s32.totalorder %s2543_s30, %s2537_s21 }
  0xdd   : > { %v1324_v31 = vld [vmem:[#allocation12 + $0x8] sm:$0xff]  ;;  %v1214_v34 = vld [vmem:[#allocation10 + $0x18] sm:$0xff]  ;;  %v2263_v35 = vld [vmem:[#allocation7 + $0x40] sm:$0xff]  }
  0xde   : > { %2027 = vmatpush3.bf16.msra.mxu0 %v2253_v7  ;;  %v1325_v36 = vld [vmem:[#allocation12 + $0x10] sm:$0xff]  ;;  %v1326_v37 = vld [vmem:[#allocation12 + $0x18] sm:$0xff]  ;;  %v1215_v38 = vld [vmem:[#allocation10 + $0x20] sm:$0xff]  ;;  %p2546_p2 = por %p2545_p13, %p2544_p10 }
  0xdf   : > { %2028 = vmatprep.subr.bf16.mxu0 %v2254_v11  ;;  %v2264_v39 = vld [vmem:[#allocation7 + $0x48] sm:$0xff]   ;;  %v2265_v41 = vld [vmem:[#allocation7 + $0x50] sm:$0xff]   ;;  %v1327_v42 = vld [vmem:[#allocation12 + $0x20] sm:$0xff] }
  0xe0   : > { %541 = vperm.xlu0 %2249, %v459_v12   ;;  %546 = vperm.xlu1 %2250, %v460_v13   ;;  %v1216_v40 = vld [vmem:[#allocation10 + $0x28] sm:$0xff]  ;;  %v1217_v44 = vld [vmem:[#allocation10 + $0x30] sm:$0xff]  ;;  %v2266_v45 = vld [vmem:[#allocation7 + $0x58] sm:$0xff]   ;;  %p2547_p8 = pnand %p2546_p2, %p2540_p7 }
  0xe1   : > { %v1328_v43 = vld [vmem:[#allocation12 + $0x28] sm:$0xff]  ;;  %v1218_v46 = vld [vmem:[#allocation10 + $0x38] sm:$0xff]  ;;  %v1329_v47 = vld [vmem:[#allocation12 + $0x30] sm:$0xff] }
  0xe2   : > { %2029 = vmatpush3.bf16.msra.mxu0 %v2254_v11  ;;  %v1330_v48 = vld [vmem:[#allocation12 + $0x38] sm:$0xff]  ;;  %v1219_v49 = vld [vmem:[#allocation10 + $0x40] sm:$0xff]  ;;  %v1220_v50 = vld [vmem:[#allocation10 + $0x48] sm:$0xff] }
  0xe3   : > { %v1221_v51 = vld [vmem:[#allocation10 + $0x50] sm:$0xff]  ;;  %v1222_v52 = vld [vmem:[#allocation10 + $0x58] sm:$0xff]  ;;  %v1331_v53 = vld [vmem:[#allocation12 + $0x40] sm:$0xff] }
  0xe4   : > { %551 = vperm.xlu0 %2249, %v461_v14   ;;  %556 = vperm.xlu1 %2250, %v462_v16   ;;  %v1332_v54 = vld [vmem:[#allocation12 + $0x48] sm:$0xff]  ;;  %v1333_v55 = vld [vmem:[#allocation12 + $0x50] sm:$0xff]  ;;  %v1334_v56 = vld [vmem:[#allocation12 + $0x58] sm:$0xff] }
  0xe5   : > { %2031 = vmatmul.mubr.msk.bf16.vlgmr.msra.gmra.mrb[0].mxu0 %vm404_vm0, %v2256_v15  ;;  %v1223_v57 = vld [vmem:[#allocation10 + $0x60] sm:$0xff]  ;;  %v1224_v58 = vld [vmem:[#allocation10 + $0x68] sm:$0xff]  ;;  %v1225_v59 = vld [vmem:[#allocation10 + $0x70] sm:$0xff] }
  0xe6   : > { %2034 = vmatprep.mubr.msk.bf16.mxu0 %vm404_vm0, %v2257_v17  ;;  %v1226_v60 = vld [vmem:[#allocation10 + $0x78] sm:$0xff]  ;;  %v1335_v61 = vld [vmem:[#allocation12 + $0x60] sm:$0xff]  ;;  %v1336_v62 = vld [vmem:[#allocation12 + $0x68] sm:$0xff] }
  0xe7   : > { %v1337_v63 = vld [vmem:[#allocation12 + $0x70] sm:$0xff]  ;;  %v1338_v0 = vld [vmem:[#allocation12 + $0x78] sm:$0xff]  ;;  %v445_v1 = vld [vmem:[#allocation9] sm:$0xff] }
  0xe8   : > { %561 = vperm.xlu0 %2249, %v463_v18   ;;  %566 = vperm.xlu1 %2250, %v464_v19   ;;  %v446_v2 = vld [vmem:[#allocation9 + $0x8] sm:$0xff]  ;;  %v447_v3 = vld [vmem:[#allocation9 + $0x10] sm:$0xff]  ;;  %v448_v4 = vld [vmem:[#allocation9 + $0x18] sm:$0xff] }
  0xe9   : > { %v449_v5 = vld [vmem:[#allocation9 + $0x20] sm:$0xff]  ;;  %v450_v6 = vld [vmem:[#allocation9 + $0x28] sm:$0xff]  ;;  %v451_v7 = vld [vmem:[#allocation9 + $0x30] sm:$0xff] }
  0xea   : > { %v452_v8 = vld [vmem:[#allocation9 + $0x38] sm:$0xff] }
  0xec   : > { %571 = vperm.xlu0 %2249, %v465_v20   ;;  %576 = vperm.xlu1 %2250, %v466_v22  }
  0xed   : > { %2035 = vmatmul.mubr.msk.bf16.gmra.mrb[4].mxu0 %vm404_vm0, %v2258_v21 }
  0xee   : > { %2038 = vmatprep.mubr.msk.bf16.mxu0 %vm404_vm0, %v2259_v23 }
  0xf0   : > { %581 = vperm.xlu0 %2249, %v467_v24   ;;  %586 = vperm.xlu1 %2250, %v468_v25   ;;  %v2267_v25 = vld [vmem:[#allocation13] sm:$0xff]  }
  0xf1   : > { %2070 = vmatprep.mubr.bf16.mxu1 %v2267_v25 }
  0xf4   : > { %1229 = vperm.xlu0 %2249, %v1211_v26   ;;  %1234 = vperm.xlu1 %2250, %v1212_v28  }
  0xf5   : > { %2039 = vmatmul.mubr.msk.bf16.gmra.mrb[8].mxu0 %vm404_vm0, %v2260_v27 }
  0xf6   : > { %2042 = vmatprep.mubr.msk.bf16.mxu0 %vm404_vm0, %v2261_v29 }
  0xf8   : > { %1341 = vperm.xlu0 %2249, %v1323_v30   ;;  %1346 = vperm.xlu1 %2250, %v1324_v31  }
  0xfc   : > { %1239 = vperm.xlu0 %2249, %v1213_v32   ;;  %1244 = vperm.xlu1 %2250, %v1214_v34  }
  0xfd   : > { %2043 = vmatmul.mubr.msk.bf16.gmra.mrb[12].mxu0 %vm404_vm0, %v2262_v33 }
  0xfe   : > { %2046 = vmatprep.mubr.msk.bf16.mxu0 %vm404_vm0, %v2263_v35 }
 0x100   : > { %1351 = vperm.xlu0 %2249, %v1325_v36   ;;  %1356 = vperm.xlu1 %2250, %v1326_v37  }
 0x104   : > { %1249 = vperm.xlu0 %2249, %v1215_v38   ;;  %1254 = vperm.xlu1 %2250, %v1216_v40  }
 0x105   : > { %2047 = vmatmul.mubr.msk.bf16.gmra.mrb[16].mxu0 %vm404_vm0, %v2264_v39 }
 0x106   : > { %2050 = vmatprep.mubr.msk.bf16.mxu0 %vm404_vm0, %v2265_v41 }
 0x108   : > { %1361 = vperm.xlu0 %2249, %v1327_v42   ;;  %1366 = vperm.xlu1 %2250, %v1328_v43  }
 0x10c   : > { %1259 = vperm.xlu0 %2249, %v1217_v44   ;;  %1264 = vperm.xlu1 %2250, %v1218_v46  }
 0x10d   : > { %2051 = vmatmul.mubr.msk.bf16.gmra.mrb[20].mxu0 %vm404_vm0, %v2266_v45 }
 0x110   : > { %1371 = vperm.xlu0 %2249, %v1329_v47   ;;  %1376 = vperm.xlu1 %2250, %v1330_v48  }
 0x114   : > { %1269 = vperm.xlu0 %2249, %v1219_v49   ;;  %1274 = vperm.xlu1 %2250, %v1220_v50  }
 0x118   : > { %1279 = vperm.xlu0 %2249, %v1221_v51   ;;  %1284 = vperm.xlu1 %2250, %v1222_v52  }
 0x11c   : > { %1381 = vperm.xlu0 %2249, %v1331_v53   ;;  %1386 = vperm.xlu1 %2250, %v1332_v54  }
 0x120   : > { %1391 = vperm.xlu0 %2249, %v1333_v55   ;;  %1396 = vperm.xlu1 %2250, %v1334_v56  }
 0x124   : > { %1289 = vperm.xlu0 %2249, %v1223_v57   ;;  %1294 = vperm.xlu1 %2250, %v1224_v58  }
 0x128   : > { %1299 = vperm.xlu0 %2249, %v1225_v59   ;;  %1304 = vperm.xlu1 %2250, %v1226_v60  }
 0x12c   : > { %1401 = vperm.xlu0 %2249, %v1335_v61   ;;  %1406 = vperm.xlu1 %2250, %v1336_v62  }
 0x130   : > { %1411 = vperm.xlu0 %2249, %v1337_v63   ;;  %1416 = vperm.xlu1 %2250, %v1338_v0  }
 0x134   : > { %471 = vperm.xlu0 %2249, %v445_v1   ;;  %476 = vperm.xlu1 %2250, %v446_v2  }
 0x138   : > { %481 = vperm.xlu0 %2249, %v447_v3   ;;  %486 = vperm.xlu1 %2250, %v448_v4  }
 0x13c   : > { %491 = vperm.xlu0 %2249, %v449_v5   ;;  %496 = vperm.xlu1 %2250, %v450_v6  }
 0x140   : > { %501 = vperm.xlu0 %2249, %v451_v7   ;;  %506 = vperm.xlu1 %2250, %v452_v8  }
 0x153   : > { %v2998_v9 = vpop.permute.xlu0 %511  ;;  %v3000_v10 = vpop.permute.xlu1 %521 }
 0x157   : > { %v3002_v11 = vpop.permute.xlu0 %516  ;;  %v3004_v12 = vpop.permute.xlu1 %526 }
 0x15b   : > { %v3006_v13 = vpop.permute.xlu0 %531  ;;  %v3008_v14 = vpop.permute.xlu1 %536 }
 0x15f   : > { %v3010_v15 = vpop.permute.xlu0 %541  ;;  %v3012_v16 = vpop.permute.xlu1 %546 }
 0x163   : > { %v3014_v17 = vpop.permute.xlu0 %551  ;;  %v3016_v18 = vpop.permute.xlu1 %556 }
 0x167   : > { %v3018_v19 = vpop.permute.xlu0 %561  ;;  %v3020_v20 = vpop.permute.xlu1 %566 }
 0x16b   : > { %v3022_v21 = vpop.permute.xlu0 %571  ;;  %v3024_v22 = vpop.permute.xlu1 %576 }
 0x16f   : > { %v3026_v23 = vpop.permute.xlu0 %581  ;;  %v3028_v24 = vpop.permute.xlu1 %586 }
 0x173   : > { %v3030_v26 = vpop.permute.xlu0 %1229  ;;  %v3032_v27 = vpop.permute.xlu1 %1234 }
 0x177   : > { %v3034_v28 = vpop.permute.xlu0 %1341  ;;  %v3036_v29 = vpop.permute.xlu1 %1346 }
 0x17b   : > { %v3038_v30 = vpop.permute.xlu0 %1239  ;;  %v3040_v31 = vpop.permute.xlu1 %1244 }
 0x17f   : > { %v3042_v32 = vpop.permute.xlu0 %1351  ;;  %v3044_v33 = vpop.permute.xlu1 %1356 }
 0x183   : > { %v3046_v34 = vpop.permute.xlu0 %1249  ;;  %v3048_v35 = vpop.permute.xlu1 %1254 }
 0x187   : > { %v3050_v36 = vpop.permute.xlu0 %1361  ;;  %v3052_v37 = vpop.permute.xlu1 %1366 }
 0x18b   : > { %v3054_v38 = vpop.permute.xlu0 %1259  ;;  %v3056_v39 = vpop.permute.xlu1 %1264 }
 0x18f   : > { %v3058_v40 = vpop.permute.xlu0 %1371  ;;  %v3060_v41 = vpop.permute.xlu1 %1376 }
 0x193   : > { %v3062_v42 = vpop.permute.xlu0 %1269  ;;  %v3064_v43 = vpop.permute.xlu1 %1274 }
 0x197   : > { %v3066_v44 = vpop.permute.xlu0 %1279  ;;  %v3068_v45 = vpop.permute.xlu1 %1284 }
 0x19b   : > { %v3070_v46 = vpop.permute.xlu0 %1381  ;;  %v3072_v47 = vpop.permute.xlu1 %1386 }
 0x19c   : > { %3555 = vst [vmem:[#allocation23_spill] sm:$0xff] %v3070_v46  ;;  %3556 = vst [vmem:[#allocation24_spill] sm:$0xff] %v3072_v47 }
 0x19f   : > { %v3074_v48 = vpop.permute.xlu0 %1391  ;;  %v3076_v49 = vpop.permute.xlu1 %1396 }
 0x1a3   : > { %v3078_v50 = vpop.permute.xlu0 %1289  ;;  %v3080_v51 = vpop.permute.xlu1 %1294 }
 0x1a4   : > { %3557 = vst [vmem:[#allocation25_spill] sm:$0xff] %v3078_v50  ;;  %3558 = vst [vmem:[#allocation26_spill] sm:$0xff] %v3080_v51 }
 0x1a7   : > { %v3082_v52 = vpop.permute.xlu0 %1299  ;;  %v3084_v53 = vpop.permute.xlu1 %1304 }
 0x1a8   : > { %3559 = vst [vmem:[#allocation27_spill] sm:$0xff] %v3082_v52  ;;  %3560 = vst [vmem:[#allocation28_spill] sm:$0xff] %v3084_v53 }
 0x1ab   : > { %v3086_v54 = vpop.permute.xlu0 %1401  ;;  %v3088_v55 = vpop.permute.xlu1 %1406 }
 0x1ac   : > { %3561 = vst [vmem:[#allocation29_spill] sm:$0xff] %v3086_v54  ;;  %3562 = vst [vmem:[#allocation30_spill] sm:$0xff] %v3088_v55 }
 0x1af   : > { %v3090_v56 = vpop.permute.xlu0 %1411  ;;  %v3092_v57 = vpop.permute.xlu1 %1416 }
 0x1b0   : > { %3563 = vst [vmem:[#allocation31_spill] sm:$0xff] %v3090_v56  ;;  %3564 = vst [vmem:[#allocation32_spill] sm:$0xff] %v3092_v57 }
 0x1b3   : > { %v472_v58 = vpop.permute.xlu0 %471  ;;  %v477_v59 = vpop.permute.xlu1 %476 }
 0x1b7   : > { %v482_v60 = vpop.permute.xlu0 %481  ;;  %v487_v61 = vpop.permute.xlu1 %486 }
 0x1b8   : > { %v2032_v62 = vpop.f32.mrb[0].mxu0 }
 0x1b9   : > { %v744_v63 = vpop.f32.mrb[1].mxu0  ;;  %v753_v2 = vadd.f32 %v2032_v62, %v482_v60 }
 0x1ba   : > { %v2033_v0 = vpop.f32.mrb[2].mxu0  ;;  %v745_v6 = vadd.f32 %v744_v63, %v472_v58 }
 0x1bb   : > { %v492_v1 = vpop.permute.xlu0 %491  ;;  %v756_v3 = vadd.f32 %v2033_v0, %v487_v61  ;;  %v747_v4 = vpop.f32.mrb[3].mxu0 }
 0x1bc   : > { %v497_v5 = vpop.permute.xlu1 %496  ;;  %v748_v7 = vadd.f32 %v747_v4, %v477_v59 }
 0x1bd   : > { %v3094_v8 = vpack.c.bf16 %v756_v3, %v753_v2 }
 0x1be   : > { %v3096_v25 = vpack.c.bf16 %v748_v7, %v745_v6 }
 0x1bf   : > { %v502_v55 = vpop.permute.xlu0 %501 }
 0x1c0   : > { %v2036_v54 = vpop.f32.mrb[4].mxu0  ;;  %v507_v57 = vpop.permute.xlu1 %506 }
 0x1c1   : > { %v760_v56 = vpop.f32.mrb[5].mxu0  ;;  %v769_v53 = vadd.f32 %v2036_v54, %v502_v55 }
 0x1c2   : > { %v2037_v51 = vpop.f32.mrb[6].mxu0  ;;  %v761_v47 = vadd.f32 %v760_v56, %v492_v1 }
 0x1c3   : > { %v772_v52 = vadd.f32 %v2037_v51, %v507_v57  ;;  %v763_v50 = vpop.f32.mrb[7].mxu0 }
 0x1c4   : > { %v764_v46 = vadd.f32 %v763_v50, %v497_v5 }
 0x1c5   : > { %v3098_v60 = vpack.c.bf16 %v772_v52, %v769_v53 }
 0x1c6   : > { %v3100_v61 = vpack.c.bf16 %v764_v46, %v761_v47 }
 0x1c8   : > { %v2040_v58 = vpop.f32.mrb[8].mxu0 }
 0x1c9   : > { %v3103_v59 = vadd.f32 %v2040_v58, %v3000_v10  ;;  %v776_v62 = vpop.f32.mrb[9].mxu0 }
 0x1ca   : > { %v3106_v63 = vadd.f32 %v776_v62, %v2998_v9  ;;  %v2041_v0 = vpop.f32.mrb[10].mxu0 }
 0x1cb   : > { %v3109_v2 = vadd.f32 %v2041_v0, %v3004_v12  ;;  %v779_v51 = vpop.f32.mrb[11].mxu0  ;;  %v852_v9 = vmul.f32 %v3103_v59, %v3103_v59 }
 0x1cc   : > { %v3112_v54 = vadd.f32 %v779_v51, %v3002_v11  ;;  %v850_v46 = vmul.f32 %v3106_v63, %v3106_v63 }
 0x1cd   : > { %v853_v47 = vmul.f32 %v3109_v2, %v3109_v2 }
 0x1ce   : > { %v851_v10 = vmul.f32 %v3112_v54, %v3112_v54 }
 0x1cf   : > { %v867_v55 = vpack.c.bf16 %v853_v47, %v852_v9 }
 0x1d0   : > { %v2044_v50 = vpop.f32.mrb[12].mxu0  ;;  %v866_v52 = vpack.c.bf16 %v851_v10, %v850_v46 }
 0x1d1   : > { %v792_v12 = vpop.f32.mrb[13].mxu0  ;;  %v3129_v1 = vadd.f32 %v2044_v50, %v3010_v15 }
 0x1d2   : > { %v3123_v53 = vadd.f32 %v792_v12, %v3006_v13  ;;  %v2045_v11 = vpop.f32.mrb[14].mxu0  ;;  %2054 = vmatprep.subr.bf16.mxu1 %v866_v52 }
 0x1d3   : > { %v3126_v56 = vadd.f32 %v2045_v11, %v3012_v16  ;;  %v795_v57 = vpop.f32.mrb[15].mxu0  ;;  %2055 = vmatpush3.bf16.msra.mxu1 %v866_v52  ;;  %v856_v16 = vmul.f32 %v3129_v1, %v3129_v1 }
 0x1d4   : > { %v3132_v3 = vadd.f32 %v795_v57, %v3008_v14  ;;  %2056 = vmatprep.subr.bf16.mxu1 %v867_v55  ;;  %v854_v4 = vmul.f32 %v3123_v53, %v3123_v53 }
 0x1d5   : > { %v857_v13 = vmul.f32 %v3126_v56, %v3126_v56 }
 0x1d6   : > { %v855_v5 = vmul.f32 %v3132_v3, %v3132_v3 }
 0x1d7   : > { %2057 = vmatpush3.bf16.msra.mxu1 %v867_v55  ;;  %v869_v62 = vpack.c.bf16 %v857_v13, %v856_v16 }
 0x1d8   : > { %v2048_v6 = vpop.f32.mrb[16].mxu0  ;;  %v868_v15 = vpack.c.bf16 %v855_v5, %v854_v4 }
 0x1d9   : > { %v808_v7 = vpop.f32.mrb[17].mxu0  ;;  %v3149_v46 = vadd.f32 %v2048_v6, %v3018_v19 }
 0x1da   : > { %v3143_v14 = vadd.f32 %v808_v7, %v3014_v17  ;;  %v2049_v58 = vpop.f32.mrb[18].mxu0  ;;  %2058 = vmatprep.subr.bf16.mxu1 %v868_v15  ;;  %v2270_v7 = vld [vmem:[#allocation13 + $0x18] sm:$0xff]  }
 0x1db   : > { %v3146_v0 = vadd.f32 %v2049_v58, %v3020_v20  ;;  %v811_v51 = vpop.f32.mrb[19].mxu0  ;;  %2059 = vmatpush3.bf16.msra.mxu1 %v868_v15  ;;  %v860_v20 = vmul.f32 %v3149_v46, %v3149_v46  ;;  %v2269_v15 = vld [vmem:[#allocation13 + $0x10] sm:$0xff]   ;;  %v2271_v58 = vld [vmem:[#allocation13 + $0x20] sm:$0xff]  }
 0x1dc   : > { %v3152_v47 = vadd.f32 %v811_v51, %v3016_v18  ;;  %2060 = vmatprep.subr.bf16.mxu1 %v869_v62  ;;  %v858_v10 = vmul.f32 %v3143_v14, %v3143_v14  ;;  %v2273_v51 = vld [vmem:[#allocation13 + $0x30] sm:$0xff]  }
 0x1dd   : > { %v861_v17 = vmul.f32 %v3146_v0, %v3146_v0 }
 0x1de   : > { %v859_v9 = vmul.f32 %v3152_v47, %v3152_v47 }
 0x1df   : > { %2061 = vmatpush3.bf16.msra.mxu1 %v869_v62  ;;  %v871_v11 = vpack.c.bf16 %v861_v17, %v860_v20  ;;  %v2272_v62 = vld [vmem:[#allocation13 + $0x28] sm:$0xff]  }
 0x1e0   : > { %v2052_v50 = vpop.f32.mrb[20].mxu0  ;;  %v870_v19 = vpack.c.bf16 %v859_v9, %v858_v10  ;;  %v2645_v10 = vmov 0.0  }
 0x1e1   : > { %v824_v52 = vpop.f32.mrb[21].mxu0  ;;  %v3169_v4 = vadd.f32 %v2052_v50, %v3026_v23  ;;  %407 = vst.msk [vmem:[#allocation2 + $0x10] sm:$0xff] %vm404_vm0, %v2645_v10  ;;  %405 = vst.msk [vmem:[#allocation2] sm:$0xff] %vm404_vm0, %v2645_v10 }
 0x1e2   : > { %v3163_v18 = vadd.f32 %v824_v52, %v3022_v21  ;;  %v2053_v12 = vpop.f32.mrb[22].mxu0  ;;  %2062 = vmatprep.subr.bf16.mxu1 %v870_v19  ;;  %406 = vst.msk [vmem:[#allocation2 + $0x8] sm:$0xff] %vm404_vm0, %v2645_v10  ;;  %408 = vst.msk [vmem:[#allocation2 + $0x18] sm:$0xff] %vm404_vm0, %v2645_v10  ;;  %v1436_v52 = vlaneseq }
 0x1e3   : > { %v3166_v55 = vadd.f32 %v2053_v12, %v3028_v24  ;;  %v827_v57 = vpop.f32.mrb[23].mxu0  ;;  %2063 = vmatpush3.bf16.msra.mxu1 %v870_v19  ;;  %3566 = vst [vmem:[#allocation34_spill] sm:$0xff] %v3169_v4  ;;  %v864_v24 = vmul.f32 %v3169_v4, %v3169_v4  ;;  %409 = vst.msk [vmem:[#allocation2 + $0x20] sm:$0xff] %vm404_vm0, %v2645_v10 }
 0x1e4   : > { %v3172_v13 = vadd.f32 %v827_v57, %v3024_v22  ;;  %2064 = vmatprep.subr.bf16.mxu1 %v871_v11  ;;  %v862_v5 = vmul.f32 %v3163_v18, %v3163_v18  ;;  %v2268_v22 = vld [vmem:[#allocation13 + $0x8] sm:$0xff]   ;;  %410 = vst.msk [vmem:[#allocation2 + $0x28] sm:$0xff] %vm404_vm0, %v2645_v10  ;;  %411 = vst.msk [vmem:[#allocation2 + $0x30] sm:$0xff] %vm404_vm0, %v2645_v10 }
 0x1e5   : > { %3565 = vst [vmem:[#allocation33_spill] sm:$0xff] %v3166_v55  ;;  %v865_v21 = vmul.f32 %v3166_v55, %v3166_v55  ;;  %412 = vst.msk [vmem:[#allocation2 + $0x38] sm:$0xff] %vm404_vm0, %v2645_v10 }
 0x1e6   : > { %3567 = vst [vmem:[#allocation35_spill] sm:$0xff] %v3172_v13  ;;  %v863_v16 = vmul.f32 %v3172_v13, %v3172_v13 }
 0x1e7   : > { %2065 = vmatpush3.bf16.msra.mxu1 %v871_v11  ;;  %v873_v23 = vpack.c.bf16 %v865_v21, %v864_v24 }
 0x1e8   : > { %v872_v6 = vpack.c.bf16 %v863_v16, %v862_v5  ;;  %v3208_v16 = vand.u32 127, %v1436_v52 }
 0x1ea   : > { %2066 = vmatprep.subr.bf16.mxu1 %v872_v6 }
 0x1eb   : > { %2067 = vmatpush3.bf16.msra.mxu1 %v872_v6 }
 0x1ec   : > { %2068 = vmatprep.subr.bf16.mxu1 %v873_v23 }
 0x1ef   : > { %2069 = vmatpush3.bf16.msra.mxu1 %v873_v23 }
 0x1f0   : > { %2102 = vmatprep.subr.bf16.mxu1 %v3096_v25 }
 0x1f2   : > { %2071 = vmatmul.mubr.bf16.vlgmr.msra.gmra.mrb[0].mxu1 %v2268_v22 }
 0x1f3   : > { %2103 = vmatpush3.bf16.msra.mxu1 %v3096_v25  ;;  %2074 = vmatprep.mubr.bf16.mxu1 %v2269_v15  ;;  %v2274_v25 = vld [vmem:[#allocation13 + $0x38] sm:$0xff]  }
 0x1f4   : > { %2104 = vmatprep.subr.bf16.mxu1 %v3094_v8 }
 0x1f7   : > { %2105 = vmatpush3.bf16.msra.mxu1 %v3094_v8 }
 0x1f8   : > { %2106 = vmatprep.subr.bf16.mxu1 %v3100_v61 }
 0x1fa   : > { %2075 = vmatmul.mubr.bf16.gmra.mrb[4].mxu1 %v2270_v7 }
 0x1fb   : > { %2107 = vmatpush3.bf16.msra.mxu1 %v3100_v61  ;;  %2078 = vmatprep.mubr.bf16.mxu1 %v2271_v58 }
 0x1fc   : > { %2108 = vmatprep.subr.bf16.mxu1 %v3098_v60 }
 0x1ff   : > { %2109 = vmatpush3.bf16.msra.mxu1 %v3098_v60 }
 0x202   : > { %2079 = vmatmul.mubr.bf16.gmra.mrb[8].mxu1 %v2272_v62 }
 0x203   : > { %2082 = vmatprep.mubr.bf16.mxu1 %v2273_v51 }
 0x20a   : > { %2083 = vmatmul.mubr.bf16.gmra.mrb[12].mxu1 %v2274_v25 }
 0x2c5   : > { %v2072_v8 = vpop.f32.mrb[0].mxu1 }
 0x2c6   : > { %v1037_v60 = vmul.f32 0.33333334, %v2072_v8  ;;  %v972_v61 = vpop.f32.mrb[1].mxu1 }
 0x2c7   : > { %v1035_v17 = vmul.f32 0.33333334, %v972_v61  ;;  %v2073_v9 = vpop.f32.mrb[2].mxu1 }
 0x2c8   : > { %2275 = vrsqrt.f32 %v1037_v60  ;;  %v975_v20 = vpop.f32.mrb[3].mxu1  ;;  %v3198_v50 = vmul.f32 0.33333334, %v2073_v9  ;;  %vm1067_vm1 = vcmp.eq.f32.partialorder %v1037_v60, inf  ;;  %vm1069_vm2 = vcmp.eq.f32.partialorder %v1037_v60, 0.0 }
 0x2c9   : > { %2277 = vrsqrt.f32 %v1035_v17  ;;  %v3200_v19 = vmul.f32 0.33333334, %v975_v20  ;;  %v1070_v24 = vand.u32 2147483648, %v1037_v60  ;;  %vm1053_vm3 = vcmp.eq.f32.partialorder %v1035_v17, inf }
 0x2ca   : > { %2279 = vrsqrt.f32 %v3198_v50  ;;  %vm1055_vm4 = vcmp.eq.f32.partialorder %v1035_v17, 0.0  ;;  %v1056_v23 = vand.u32 2147483648, %v1035_v17  ;;  %vm1074_vm5 = vcmp.eq.f32.partialorder %v3198_v50, inf }
 0x2cb   : > { %2281 = vrsqrt.f32 %v3200_v19  ;;  %vm1076_vm6 = vcmp.eq.f32.partialorder %v3198_v50, 0.0  ;;  %v1077_v51 = vand.u32 2147483648, %v3198_v50  ;;  %vm1060_vm7 = vcmp.eq.f32.partialorder %v3200_v19, inf }
 0x2cc   : > { %vm1062_vm8 = vcmp.eq.f32.partialorder %v3200_v19, 0.0  ;;  %v1063_v10 = vand.u32 2147483648, %v3200_v19 }
 0x2cd   : > { %v2076_v12 = vpop.f32.mrb[4].mxu1 }
 0x2ce   : > { %v3204_v11 = vmul.f32 0.33333334, %v2076_v12  ;;  %v988_v57 = vpop.f32.mrb[5].mxu1 }
 0x2cf   : > { %v3206_v5 = vmul.f32 0.33333334, %v988_v57  ;;  %v2077_v21 = vpop.f32.mrb[6].mxu1 }
 0x2d0   : > { %2283 = vrsqrt.f32 %v3204_v11  ;;  %v991_v6 = vpop.f32.mrb[7].mxu1  ;;  %v3214_v15 = vmul.f32 0.33333334, %v2077_v21  ;;  %vm1095_vm9 = vcmp.eq.f32.partialorder %v3204_v11, inf  ;;  %vm1097_vm10 = vcmp.eq.f32.partialorder %v3204_v11, 0.0 }
 0x2d1   : > { %2285 = vrsqrt.f32 %v3206_v5  ;;  %v3216_v7 = vmul.f32 0.33333334, %v991_v6  ;;  %v1098_v61 = vand.u32 2147483648, %v3204_v11  ;;  %vm1081_vm11 = vcmp.eq.f32.partialorder %v3206_v5, inf }
 0x2d2   : > { %v2276_v22 = vpop.eup %2275  ;;  %2287 = vrsqrt.f32 %v3214_v15  ;;  %vm1083_vm12 = vcmp.eq.f32.partialorder %v3206_v5, 0.0  ;;  %vm1102_vm13 = vcmp.eq.f32.partialorder %v3214_v15, inf  ;;  %vm1104_vm14 = vcmp.eq.f32.partialorder %v3214_v15, 0.0 }
 0x2d3   : > { %v2278_v58 = vpop.eup %2277  ;;  %v1066_v62 = vmul.f32 %v2276_v22, %v1037_v60  ;;  %2289 = vrsqrt.f32 %v3216_v7  ;;  %vm1088_vm15 = vcmp.eq.f32.partialorder %v3216_v7, inf }
 0x2d4   : > { %v1052_v25 = vmul.f32 %v2278_v58, %v1035_v17  ;;  %v2280_v20 = vpop.eup %2279  ;;  %v1084_v58 = vand.u32 2147483648, %v3206_v5 }
 0x2d5   : > { %v1068_v8 = vsel %vm1067_vm1, %v1037_v60, %v1066_v62  ;;  %v2080_v9 = vpop.f32.mrb[8].mxu1  ;;  %v2282_v21 = vpop.eup %2281  ;;  %v1073_v22 = vmul.f32 %v2280_v20, %v3198_v50  ;;  %vm1090_vm1 = vcmp.eq.f32.partialorder %v3216_v7, 0.0 }
 0x2d6   : > { %v1071_v52 = vsel %vm1069_vm2, %v1070_v24, %v1068_v8  ;;  %v1054_v12 = vsel %vm1053_vm3, %v1035_v17, %v1052_v25  ;;  %v1004_v57 = vpop.f32.mrb[9].mxu1  ;;  %v3235_v62 = vmul.f32 0.33333334, %v2080_v9  ;;  %v1059_v60 = vmul.f32 %v2282_v21, %v3200_v19 }
 0x2d7   : > { %v1057_v6 = vsel %vm1055_vm4, %v1056_v23, %v1054_v12  ;;  %v2081_v13 = vpop.f32.mrb[10].mxu1  ;;  %v3239_v24 = vmul.f32 0.33333334, %v1004_v57  ;;  %v1165_v25 = vadd.f32 1e-05, %v1071_v52  ;;  %v1075_v17 = vsel %vm1074_vm5, %v3198_v50, %v1073_v22 }
 0x2d8   : > { %v1163_v55 = vadd.f32 1e-05, %v1057_v6  ;;  %v1105_v23 = vand.u32 2147483648, %v3214_v15  ;;  %v1007_v8 = vpop.f32.mrb[11].mxu1  ;;  %v1078_v20 = vsel %vm1076_vm6, %v1077_v51, %v1075_v17  ;;  %v1061_v52 = vsel %vm1060_vm7, %v3200_v19, %v1059_v60 }
 0x2d9   : > { %v3252_v12 = vmul.f32 0.33333334, %v2081_v13  ;;  %v1166_v21 = vadd.f32 1e-05, %v1078_v20  ;;  %v1064_v6 = vsel %vm1062_vm8, %v1063_v10, %v1061_v52  ;;  %v1091_v50 = vand.u32 2147483648, %v3216_v7 }
 0x2da   : > { %v2284_v9 = vpop.eup %2283  ;;  %2291 = vrcp.f32 %v1163_v55  ;;  %v1164_v4 = vadd.f32 1e-05, %v1064_v6  ;;  %vm1123_vm2 = vcmp.eq.f32.partialorder %v3235_v62, inf  ;;  %vm1125_vm3 = vcmp.eq.f32.partialorder %v3235_v62, 0.0 }
 0x2db   : > { %v2286_v57 = vpop.eup %2285  ;;  %v1094_v22 = vmul.f32 %v2284_v9, %v3204_v11  ;;  %2293 = vrsqrt.f32 %v3235_v62  ;;  %vm1109_vm4 = vcmp.eq.f32.partialorder %v3239_v24, inf  ;;  %vm1111_vm5 = vcmp.eq.f32.partialorder %v3239_v24, 0.0 }
 0x2dc   : > { %v1080_v55 = vmul.f32 %v2286_v57, %v3206_v5  ;;  %2295 = vrsqrt.f32 %v3239_v24  ;;  %v2288_v51 = vpop.eup %2287  ;;  %vm1130_vm6 = vcmp.eq.f32.partialorder %v3252_v12, inf  ;;  %vm1132_vm7 = vcmp.eq.f32.partialorder %v3252_v12, 0.0 }
 0x2dd   : > { %2297 = vrcp.f32 %v1165_v25  ;;  %v1096_v13 = vsel %vm1095_vm9, %v3204_v11, %v1094_v22  ;;  %v2084_v19 = vpop.f32.mrb[12].mxu1  ;;  %v1126_v25 = vand.u32 2147483648, %v3235_v62  ;;  %v2290_v9 = vpop.eup %2289  ;;  %v1101_v57 = vmul.f32 %v2288_v51, %v3214_v15 }
 0x2de   : > { %2299 = vrcp.f32 %v1166_v21  ;;  %v1099_v10 = vsel %vm1097_vm10, %v1098_v61, %v1096_v13  ;;  %v1082_v60 = vsel %vm1081_vm11, %v3206_v5, %v1080_v55  ;;  %v1020_v17 = vpop.f32.mrb[13].mxu1  ;;  %v1087_v21 = vmul.f32 %v2290_v9, %v3216_v7 }
 0x2df   : > { %v1169_v20 = vadd.f32 1e-05, %v1099_v10  ;;  %v1085_v52 = vsel %vm1083_vm12, %v1084_v58, %v1082_v60  ;;  %2301 = vrsqrt.f32 %v3252_v12  ;;  %v2085_v11 = vpop.f32.mrb[14].mxu1  ;;  %v1103_v22 = vsel %vm1102_vm13, %v3214_v15, %v1101_v57 }
 0x2e0   : > { %2303 = vrcp.f32 %v1164_v4  ;;  %v1167_v61 = vadd.f32 1e-05, %v1085_v52  ;;  %v1023_v6 = vpop.f32.mrb[15].mxu1  ;;  %v3282_v55 = vmul.f32 0.33333334, %v1007_v8  ;;  %v1106_v58 = vsel %vm1104_vm14, %v1105_v23, %v1103_v22 }
 0x2e1   : > { %2305 = vrcp.f32 %v1169_v20  ;;  %v3284_v5 = vmul.f32 0.33333334, %v2084_v19  ;;  %v1089_v4 = vsel %vm1088_vm15, %v3216_v7, %v1087_v21  ;;  %v1170_v13 = vadd.f32 1e-05, %v1106_v58 }
 0x2e2   : > { %2307 = vrcp.f32 %v1167_v61  ;;  %v1092_v51 = vsel %vm1090_vm1, %v1091_v50, %v1089_v4  ;;  %v3295_v8 = vmul.f32 0.33333334, %v1020_v17  ;;  %v1112_v60 = vand.u32 2147483648, %v3239_v24 }
 0x2e3   : > { %2309 = vrsqrt.f32 %v3282_v55  ;;  %v1168_v10 = vadd.f32 1e-05, %v1092_v51  ;;  %v1133_v23 = vand.u32 2147483648, %v3252_v12  ;;  %vm1116_vm8 = vcmp.eq.f32.partialorder %v3282_v55, inf }
 0x2e4   : > { %v2292_v19 = vpop.eup %2291  ;;  %2311 = vrsqrt.f32 %v3284_v5  ;;  %vm1118_vm9 = vcmp.eq.f32.partialorder %v3282_v55, 0.0  ;;  %v1119_v17 = vand.u32 2147483648, %v3282_v55  ;;  %vm1151_vm10 = vcmp.eq.f32.partialorder %v3284_v5, inf }
 0x2e5   : > { %v2294_v15 = vpop.eup %2293  ;;  %2313 = vrcp.f32 %v1170_v13  ;;  %v3309_v52 = vmul.f32 0.33333334, %v2085_v11  ;;  %vm1440_vm11 = vcmp.lt.s32.totalorder %v3208_v16, 64  ;;  %vm1153_vm12 = vcmp.eq.f32.partialorder %v3284_v5, 0.0 }
 0x2e6   : > { %v2296_v7 = vpop.eup %2295  ;;  %2315 = vrcp.f32 %v1168_v10  ;;  %v1122_v50 = vmul.f32 %v2294_v15, %v3235_v62  ;;  %v1154_v21 = vand.u32 2147483648, %v3284_v5  ;;  %v3317_v22 = vmul.f32 0.33333334, %v1023_v6 }
 0x2e7   : > { %v2298_v9 = vpop.eup %2297  ;;  %v1108_v20 = vmul.f32 %v2296_v7, %v3239_v24  ;;  %2317 = vrsqrt.f32 %v3295_v8  ;;  %vm1137_vm13 = vcmp.eq.f32.partialorder %v3295_v8, inf  ;;  %v1195_v13 = vmul.f32 %v2292_v19, %v3106_v63 }
 0x2e8   : > { %v2300_v57 = vpop.eup %2299  ;;  %v1124_v61 = vsel %vm1123_vm2, %v3235_v62, %v1122_v50  ;;  %2319 = vrsqrt.f32 %v3309_v52  ;;  %vm1139_vm14 = vcmp.eq.f32.partialorder %v3295_v8, 0.0  ;;  %v1197_v62 = vmul.f32 %v2298_v9, %v3103_v59 }
 0x2e9   : > { %v2302_v58 = vpop.eup %2301  ;;  %v1127_v4 = vsel %vm1125_vm3, %v1126_v25, %v1124_v61  ;;  %v1110_v11 = vsel %vm1109_vm4, %v3239_v24, %v1108_v20  ;;  %v1140_v50 = vand.u32 2147483648, %v3295_v8  ;;  %vm1158_vm15 = vcmp.eq.f32.partialorder %v3309_v52, inf  ;;  %vm3373_vm4 = vmpackc.low %vm1440_vm11, %vm1440_vm11 }
 0x2ea   : > { %v2304_v51 = vpop.eup %2303  ;;  %v1173_v10 = vadd.f32 1e-05, %v1127_v4  ;;  %v1113_v6 = vsel %vm1111_vm5, %v1112_v60, %v1110_v11  ;;  %v1129_v15 = vmul.f32 %v2302_v58, %v3252_v12  ;;  %2321 = vrsqrt.f32 %v3317_v22 }
 0x2eb   : > { %v2306_v25 = vpop.eup %2305  ;;  %v1171_v7 = vadd.f32 1e-05, %v1113_v6  ;;  %vm1160_vm1 = vcmp.eq.f32.partialorder %v3309_v52, 0.0  ;;  %v1161_v19 = vand.u32 2147483648, %v3309_v52  ;;  %v1147_v59 = vand.u32 2147483648, %v3317_v22 }
 0x2ec   : > { %v2308_v63 = vpop.eup %2307  ;;  %2323 = vrcp.f32 %v1173_v10  ;;  %v1131_v24 = vsel %vm1130_vm6, %v3252_v12, %v1129_v15  ;;  %vm1144_vm2 = vcmp.eq.f32.partialorder %v3317_v22, inf  ;;  %v1196_v20 = vmul.f32 %v2304_v51, %v3112_v54 }
 0x2ed   : > { %v2310_v60 = vpop.eup %2309  ;;  %v1134_v9 = vsel %vm1132_vm7, %v1133_v23, %v1131_v24  ;;  %v1307_v61 = vmul.f32 %v3030_v26, %v1195_v13  ;;  %v1198_v58 = vmul.f32 %v2300_v57, %v3109_v2  ;;  %vm1146_vm3 = vcmp.eq.f32.partialorder %v3317_v22, 0.0 }
 0x2ee   : > { %v2312_v4 = vpop.eup %2311  ;;  %v1174_v11 = vadd.f32 1e-05, %v1134_v9  ;;  %v1115_v10 = vmul.f32 %v2310_v60, %v3282_v55  ;;  %v1309_v6 = vmul.f32 %v3038_v30, %v1197_v62  ;;  %v1199_v15 = vmul.f32 %v2308_v63, %v3123_v53 }
 0x2ef   : > { %v2314_v12 = vpop.eup %2313  ;;  %v1150_v23 = vmul.f32 %v2312_v4, %v3284_v5  ;;  %v1308_v24 = vmul.f32 %v3032_v27, %v1196_v20  ;;  %v1419_v54 = vadd.f32 %v3034_v28, %v1307_v61  ;;  %v1310_v26 = vmul.f32 %v3040_v31, %v1198_v58 }
 0x2f0   : > { %v2316_v2 = vpop.eup %2315  ;;  %2325 = vrcp.f32 %v1174_v11  ;;  %v1117_v57 = vsel %vm1116_vm8, %v3282_v55, %v1115_v10  ;;  %v1421_v13 = vadd.f32 %v3042_v32, %v1309_v6  ;;  %v1311_v30 = vmul.f32 %v3046_v34, %v1199_v15 }
 0x2f1   : > { %v2318_v53 = vpop.eup %2317  ;;  %v1120_v51 = vsel %vm1118_vm9, %v1119_v17, %v1117_v57  ;;  %v1152_v27 = vsel %vm1151_vm10, %v3284_v5, %v1150_v23  ;;  %v1420_v28 = vadd.f32 %v3036_v29, %v1308_v24  ;;  %v1422_v31 = vadd.f32 %v3044_v33, %v1310_v26 }
 0x2f2   : > { %v1172_v62 = vadd.f32 1e-05, %v1120_v51  ;;  %v1155_v63 = vsel %vm1153_vm12, %v1154_v21, %v1152_v27  ;;  %v1136_v32 = vmul.f32 %v2318_v53, %v3295_v8  ;;  %v1200_v55 = vmul.f32 %v2316_v2, %v3132_v3  ;;  %v2320_v17 = vpop.eup %2319  ;;  %v3571_v53 = vld [vmem:[#allocation24_spill] sm:$0xff]  ;;  %v3572_v27 = vld [vmem:[#allocation34_spill] sm:$0xff] }
 0x2f3   : > { %v1177_v60 = vadd.f32 1e-05, %v1155_v63  ;;  %v1913_v29 = vpack.c.bf16 %v1420_v28, %v1419_v54  ;;  %v1916_v9 = vpack.c.bf16 %v1422_v31, %v1421_v13  ;;  %v1423_v33 = vadd.f32 %v3050_v36, %v1311_v30  ;;  %v3570_v13 = vld [vmem:[#allocation23_spill] sm:$0xff]  ;;  %v3575_v31 = vld [vmem:[#allocation25_spill] sm:$0xff] }
 0x2f4   : > { %v1138_v5 = vsel %vm1137_vm13, %v3295_v8, %v1136_v32  ;;  %v1157_v21 = vmul.f32 %v2320_v17, %v3309_v52  ;;  %v1312_v16 = vmul.f32 %v3048_v35, %v1200_v55  ;;  %2327 = vrcp.f32 %v1171_v7  ;;  %v2322_v20 = vpop.eup %2321  ;;  %v3576_v63 = vld [vmem:[#allocation27_spill] sm:$0xff]  ;;  %v3577_v55 = vld [vmem:[#allocation28_spill] sm:$0xff] }
 0x2f5   : > { %v1141_v61 = vsel %vm1139_vm14, %v1140_v50, %v1138_v5  ;;  %2086 = vmatprep.subr.msk.bf16.mxu0 %vm3373_vm4, %v1913_v29  ;;  %2329 = vrcp.f32 %v1172_v62  ;;  %v1201_v3 = vmul.f32 %v2306_v25, %v3129_v1  ;;  %v1202_v36 = vmul.f32 %v2314_v12, %v3126_v56  ;;  %v3580_v5 = vld [vmem:[#allocation32_spill] sm:$0xff] }
 0x2f6   : > { %v2324_v58 = vpop.eup %2323  ;;  %v1175_v4 = vadd.f32 1e-05, %v1141_v61  ;;  %v1159_v11 = vsel %vm1158_vm15, %v3309_v52, %v1157_v21  ;;  %v1143_v35 = vmul.f32 %v2322_v20, %v3317_v22  ;;  %2087 = vmatpush3.bf16.xpose.msk.msra.mxu0 %vm3373_vm4, %v1913_v29  ;;  %v1424_v8 = vadd.f32 %v3052_v37, %v1312_v16  ;;  %v3581_v16 = vld [vmem:[#allocation29_spill] sm:$0xff]  ;;  %v3582_v61 = vld [vmem:[#allocation30_spill] sm:$0xff] }
 0x2f7   : > { %v1162_v7 = vsel %vm1160_vm1, %v1161_v19, %v1159_v11  ;;  %2088 = vmatprep.subr.msk.bf16.mxu0 %vm3373_vm4, %v1916_v9  ;;  %v1313_v56 = vmul.f32 %v3054_v38, %v1201_v3  ;;  %v1314_v1 = vmul.f32 %v3056_v39, %v1202_v36  ;;  %v1205_v25 = vmul.f32 %v2324_v58, %v3149_v46  ;;  %v1449_v11 = vld [vmem:[#allocation2] sm:$0xff] }
 0x2f8   : > { %v1178_v50 = vadd.f32 1e-05, %v1162_v7  ;;  %v1145_v10 = vsel %vm1144_vm2, %v3317_v22, %v1143_v35  ;;  %v1919_v6 = vpack.c.bf16 %v1424_v8, %v1423_v33  ;;  %2331 = vrcp.f32 %v1175_v4  ;;  %v1451_v4 = vld [vmem:[#allocation2 + $0x10] sm:$0xff]  ;;  %v1452_v8 = vld [vmem:[#allocation2 + $0x18] sm:$0xff] }
 0x2f9   : > { %v1148_v37 = vsel %vm1146_vm3, %v1147_v59, %v1145_v10  ;;  %v1425_v52 = vadd.f32 %v3058_v40, %v1313_v56  ;;  %v1426_v38 = vadd.f32 %v3060_v41, %v1314_v1  ;;  %2333 = vrcp.f32 %v1177_v60  ;;  %v3578_v60 = vld [vmem:[#allocation26_spill] sm:$0xff]  ;;  %v1450_v1 = vld [vmem:[#allocation2 + $0x8] sm:$0xff] }
 0x2fa   : > { %v2326_v19 = vpop.eup %2325  ;;  %v1176_v39 = vadd.f32 1e-05, %v1148_v37  ;;  %v1317_v12 = vmul.f32 %v3066_v44, %v1205_v25  ;;  %2335 = vrcp.f32 %v1178_v50  ;;  %v1455_v37 = vld [vmem:[#allocation2 + $0x30] sm:$0xff] }
 0x2fb   : > { %v1922_v46 = vpack.c.bf16 %v1426_v38, %v1425_v52  ;;  %v1206_v15 = vmul.f32 %v2326_v19, %v3146_v0  ;;  %v1453_v52 = vld [vmem:[#allocation2 + $0x20] sm:$0xff]  ;;  %v1456_v19 = vld [vmem:[#allocation2 + $0x38] sm:$0xff] }
 0x2fc   : > { %2337 = vrcp.f32 %v1176_v39  ;;  %v1429_v41 = vadd.f32 %v3074_v48, %v1317_v12 }
 0x2fd   : > { %v1318_v23 = vmul.f32 %v3068_v45, %v1206_v15  ;;  %v1454_v15 = vld [vmem:[#allocation2 + $0x28] sm:$0xff] }
 0x2fe   : > { %v2328_v24 = vpop.eup %2327  ;;  %2089 = vmatpush3.bf16.xpose.msk.msra.mxu0 %vm3373_vm4, %v1916_v9  ;;  %v3579_v9 = vld [vmem:[#allocation31_spill] sm:$0xff] }
 0x2ff   : > { %v2330_v22 = vpop.eup %2329  ;;  %2090 = vmatprep.subr.msk.bf16.mxu0 %vm3373_vm4, %v1919_v6  ;;  %v1203_v40 = vmul.f32 %v2328_v24, %v3143_v14  ;;  %v1430_v0 = vadd.f32 %v3076_v49, %v1318_v23  ;;  %v1560_v24 = vld [vmem:[#allocation15 + $0x18] sm:$0xff] }
 0x300   : > { %v1204_v44 = vmul.f32 %v2330_v22, %v3152_v47 }
 0x301   : > { %v1315_v59 = vmul.f32 %v3062_v42, %v1203_v40  ;;  %v1458_v54 = vpack.c.bf16 %v1430_v0, %v1429_v41  ;;  %v3573_v42 = vld [vmem:[#allocation33_spill] sm:$0xff]  ;;  %v1557_v0 = vld [vmem:[#allocation15] sm:$0xff] }
 0x302   : > { %v2332_v45 = vpop.eup %2331  ;;  %v1316_v26 = vmul.f32 %v3064_v43, %v1204_v44  ;;  %v3574_v43 = vld [vmem:[#allocation35_spill] sm:$0xff]  ;;  %v1558_v44 = vld [vmem:[#allocation15 + $0x8] sm:$0xff] }
 0x303   : > { %v1207_v2 = vmul.f32 %v2332_v45, %v3163_v18  ;;  %v2334_v57 = vpop.eup %2333  ;;  %v1427_v30 = vadd.f32 %v3570_v13, %v1315_v59 }
 0x304   : > { %v1428_v51 = vadd.f32 %v3571_v53, %v1316_v26  ;;  %v2336_v14 = vpop.eup %2335  ;;  %v1209_v48 = vmul.f32 %v2334_v57, %v3572_v27  ;;  %v1559_v26 = vld [vmem:[#allocation15 + $0x10] sm:$0xff]  ;;  %v1564_v27 = vld [vmem:[#allocation15 + $0x38] sm:$0xff] }
 0x305   : > { %v1210_v47 = vmul.f32 %v2336_v14, %v3573_v42  ;;  %v1319_v62 = vmul.f32 %v3575_v31, %v1207_v2 }
 0x306   : > { %v2338_v28 = vpop.eup %2337  ;;  %v1457_v49 = vpack.c.bf16 %v1428_v51, %v1427_v30  ;;  %2091 = vmatpush3.bf16.xpose.msk.msra.mxu0 %vm3373_vm4, %v1919_v6  ;;  %v1321_v32 = vmul.f32 %v3576_v63, %v1209_v48 }
 0x307   : > { %2092 = vmatprep.subr.msk.bf16.mxu0 %vm3373_vm4, %v1922_v46  ;;  %v1208_v18 = vmul.f32 %v2338_v28, %v3574_v43  ;;  %v1322_v17 = vmul.f32 %v3577_v55, %v1210_v47  ;;  %v1431_v20 = vadd.f32 %v3581_v16, %v1319_v62  ;;  %v1561_v28 = vld [vmem:[#allocation15 + $0x20] sm:$0xff]  ;;  %v1563_v43 = vld [vmem:[#allocation15 + $0x30] sm:$0xff] }
 0x308   : > { %2094 = vmatprep.mubr.bf16.mxu0 %v1457_v49  ;;  %v1433_v33 = vadd.f32 %v3579_v9, %v1321_v32  ;;  %v1562_v49 = vld [vmem:[#allocation15 + $0x28] sm:$0xff] }
 0x309   : > { %v1320_v29 = vmul.f32 %v3578_v60, %v1208_v18  ;;  %v1434_v21 = vadd.f32 %v3580_v5, %v1322_v17 }
 0x30b   : > { %v1432_v3 = vadd.f32 %v3582_v61, %v1320_v29  ;;  %v1460_v36 = vpack.c.bf16 %v1434_v21, %v1433_v33 }
 0x30d   : > { %v1459_v58 = vpack.c.bf16 %v1432_v3, %v1431_v20 }
 0x30e   : > { %2093 = vmatpush3.bf16.xpose.msk.msra.mxu0 %vm3373_vm4, %v1922_v46 }
 0x315   : > { %2095 = vmatmul.mubr.bf16.vlgmr.msra.gmra.mrb[24].mxu0 %v1458_v54 }
 0x316   : > { %2098 = vmatprep.mubr.bf16.mxu0 %v1459_v58 }
 0x31d   : > { %2099 = vmatmul.mubr.bf16.gmra.mrb[28].mxu0 %v1460_v36 }
 0x3e8   : > { %v2096_v35 = vpop.f32.mrb[24].mxu0 }
 0x3e9   : > { %v1532_v7 = vadd.f32 %v2096_v35, %v1451_v4  ;;  %v1499_v56 = vpop.f32.mrb[25].mxu0 }
 0x3ea   : > { %v1530_v25 = vadd.f32 %v1499_v56, %v1449_v11  ;;  %v2097_v50 = vpop.f32.mrb[26].mxu0 }
 0x3eb   : > { %1540 = vst.msk [vmem:[#allocation2 + $0x10] sm:$0xff] %vm404_vm0, %v1532_v7  ;;  %v1533_v10 = vadd.f32 %v2097_v50, %v1452_v8  ;;  %v1502_v6 = vpop.f32.mrb[27].mxu0 }
 0x3ec   : > { %1538 = vst.msk [vmem:[#allocation2] sm:$0xff] %vm404_vm0, %v1530_v25  ;;  %v1531_v34 = vadd.f32 %v1502_v6, %v1450_v1 }
 0x3ed   : > { %1541 = vst.msk [vmem:[#allocation2 + $0x18] sm:$0xff] %vm404_vm0, %v1533_v10 }
 0x3ee   : > { %1539 = vst.msk [vmem:[#allocation2 + $0x8] sm:$0xff] %vm404_vm0, %v1531_v34 }
 0x3f0   : > { %v2100_v38 = vpop.f32.mrb[28].mxu0 }
 0x3f1   : > { %v1536_v39 = vadd.f32 %v2100_v38, %v1455_v37  ;;  %v1515_v46 = vpop.f32.mrb[29].mxu0 }
 0x3f2   : > { %v1534_v12 = vadd.f32 %v1515_v46, %v1453_v52  ;;  %v2101_v23 = vpop.f32.mrb[30].mxu0  ;;  %v1551_v54 = vld [vmem:[#allocation2 + $0x10] sm:$0xff] }
 0x3f3   : > { %1544 = vst.msk [vmem:[#allocation2 + $0x30] sm:$0xff] %vm404_vm0, %v1536_v39  ;;  %v1537_v22 = vadd.f32 %v2101_v23, %v1456_v19  ;;  %v1518_v40 = vpop.f32.mrb[31].mxu0  ;;  %v1549_v41 = vld [vmem:[#allocation2] sm:$0xff]  ;;  %v1567_v53 = vmul.f32 %v1559_v26, %v1551_v54 }
 0x3f4   : > { %1542 = vst.msk [vmem:[#allocation2 + $0x20] sm:$0xff] %vm404_vm0, %v1534_v12  ;;  %v1535_v59 = vadd.f32 %v1518_v40, %v1454_v15  ;;  %v1552_v45 = vld [vmem:[#allocation2 + $0x18] sm:$0xff]  ;;  %v1565_v13 = vmul.f32 %v1557_v0, %v1549_v41 }
 0x3f5   : > { %1545 = vst.msk [vmem:[#allocation2 + $0x38] sm:$0xff] %vm404_vm0, %v1537_v22  ;;  %v1550_v2 = vld [vmem:[#allocation2 + $0x8] sm:$0xff]  ;;  %v1568_v57 = vmul.f32 %v1560_v24, %v1552_v45 }
 0x3f6   : > { %1543 = vst.msk [vmem:[#allocation2 + $0x28] sm:$0xff] %vm404_vm0, %v1535_v59  ;;  %v1566_v30 = vmul.f32 %v1558_v44, %v1550_v2 }
 0x3f7   : > { %v1574_v14 = vpack.c.bf16 %v1568_v57, %v1567_v53 }
 0x3f8   : > { %v1573_v51 = vpack.c.bf16 %v1566_v30, %v1565_v13 }
 0x3fa   : > { %2110 = vmatprep.mubr.msk.bf16.mxu1 %vm404_vm0, %v1573_v51  ;;  %v1555_v42 = vld [vmem:[#allocation2 + $0x30] sm:$0xff] }
 0x3fb   : > { %2111 = vmatmul.mubr.msk.bf16.vlgmr.msra.gmra.mrb[16].mxu1 %vm404_vm0, %v1574_v14  ;;  %v1553_v48 = vld [vmem:[#allocation2 + $0x20] sm:$0xff]  ;;  %v1571_v32 = vmul.f32 %v1563_v43, %v1555_v42 }
 0x3fc   : > { %v1556_v47 = vld [vmem:[#allocation2 + $0x38] sm:$0xff]  ;;  %v1569_v62 = vmul.f32 %v1561_v28, %v1553_v48 }
 0x3fd   : > { %v1554_v18 = vld [vmem:[#allocation2 + $0x28] sm:$0xff]  ;;  %v1572_v31 = vmul.f32 %v1564_v27, %v1556_v47 }
 0x3fe   : > { %v1570_v63 = vmul.f32 %v1562_v49, %v1554_v18 }
 0x3ff   : > { %v1576_v17 = vpack.c.bf16 %v1572_v31, %v1571_v32 }
 0x400   : > { %v1575_v55 = vpack.c.bf16 %v1570_v63, %v1569_v62 }
 0x402   : > { %2114 = vmatprep.mubr.msk.bf16.mxu1 %vm404_vm0, %v1575_v55 }
 0x403   : > { %2115 = vmatmul.mubr.msk.bf16.gmra.mrb[20].mxu1 %vm404_vm0, %v1576_v17 }
 0x4ce   : > { %v2112_v60 = vpop.f32.mrb[16].mxu1 }
 0x4cf   : > { %v1627_v29 = vpop.f32.mrb[17].mxu1 }
 0x4d0   : > { %v2113_v9 = vpop.f32.mrb[18].mxu1 }
 0x4d1   : > { %v1959_v33 = vpack.c.bf16 %v2113_v9, %v2112_v60  ;;  %v1630_v5 = vpop.f32.mrb[19].mxu1 }
 0x4d2   : > { %v1954_v21 = vpack.c.bf16 %v1630_v5, %v1627_v29 }
 0x4d3   : > { %1971 = vst [vmem:[%s398_s9 + $0x8] sm:$0xff] %v1959_v33  }
 0x4d4   : > { %1955 = vst [vmem:[%s398_s9] sm:$0xff] %v1954_v21  }
 0x4d6   : > { %v2116_v16 = vpop.f32.mrb[20].mxu1 }
 0x4d7   : > { %v1643_v20 = vpop.f32.mrb[21].mxu1 }
 0x4d8   : > { %v2117_v61 = vpop.f32.mrb[22].mxu1 }
 0x4d9   : > { %v1969_v3 = vpack.c.bf16 %v2117_v61, %v2116_v16  ;;  %v1646_v36 = vpop.f32.mrb[23].mxu1 }
 0x4da   : > { %v1964_v58 = vpack.c.bf16 %v1646_v36, %v1643_v20 }
 0x4db   : > { %1973 = vst [vmem:[%s398_s9 + $0x18] sm:$0xff] %v1969_v3  }
 0x4dc   : > { %1972 = vst [vmem:[%s398_s9 + $0x10] sm:$0xff] %v1964_v58  }
 0x4dd   : > { %2550 = shalt.err (!%p2547_p8)
}
 0x4de   : > { %s2551_s8 = scalar_lea.hbm %s3466_s19, 512  ;;  %s2555_s17 = scalar_lea.hbm %s3585_s18, 1024 }
 0x4df   : > { %p2552_p3 = scmp.ne.s32.totalorder %s3466_s19, %s2551_s8  ;;  %p2556_p9 = scmp.lt.u32.totalorder %s3466_s19, %s3585_s18 }
 0x4e0   : > { %p2557_p1 = scmp.lt.u32.totalorder %s2555_s17, %s2551_s8  ;;  %p2559_p11 = scmp.lt.u32.totalorder %s2551_s8, %s3466_s19 }
 0x4e1   : > { %p2553_p5 = pnand %p2552_p3, %p3586_p0 }
 0x4e2   : > { %p2558_p12 = por %p2557_p1, %p2556_p9 }
 0x4e3   : > { %p2554_p6 = pneg %p2553_p5 }
 0x4e4   : > { %p2560_p4 = por %p2559_p11, %p2558_p12 }
 0x4e6   : > { %p2561_p7 = pnand %p2560_p4, %p2554_p6 }
 0x4e8   : > { %2564 = shalt.err (!%p2561_p7)
}
 0x4e9   : > { %s2647_s21 = smov 64   ;;  %s2648_s12 = smov 4  }
 0x4ea   : > { %2144 = dma.vmem_to_hbm [thread:$0]  (%p3586_p0), %s3461_s13, 512, %s3466_s19, %s1699_s10, %s2647_s21, %s2647_s21, %s2648_s12  }
 0x4eb PF: > { %s1727_s14 = sand.u32 1, %s2611_s24   ;;  %p3587_p10 = scmp.ne.s32.totalorder %s3550_s7, 0 }
 0x4ec   : > { %p3588_p13 = scmp.ge.s32.totalorder %s2631_s29, 2  ;;  %s1728_s30 = scalar_lea.sflag [#allocation6], %s1727_s14 }
 0x4ee   : > { %p2170_p2 = pnand %p3588_p13, %p3587_p10 }
 0x4f0   : > { %2606 = dma.done.wait (!%p2170_p2), %s1728_s30, 512  }
 0x4f1   : > { %2608 = vsyncadd (!%p2170_p2), %s1728_s30, 4294966784  ;;  %s26_s29 = sadd.s32 1, %s2631_s29   ;;  %s3589_s24 = smov %s2615_s25 }
 0x4f2   : > { %p23_p8 = scmp.ge.s32.totalorder %s26_s29, 4   ;;  %s3590_s25 = smov %s2619_s26 }
 0x4f3   : > { %s3591_s26 = smov %s2902_s11  ;;  %s3592_s27 = smov %s2627_s28 }
 0x4f4   : > { %s3593_s28 = smov %s3595_s20  ;;  %25 = sbr.rel (!%p23_p8) target bundleno = 11 (0xb), region = 126 }
 0x4fb   :  { %1733 = vsyncpa [#allocation5], 1 }
 0x4fc   :  { %1735 = vsyncpa [#allocation5 + $0x1], 1 }
 0x4fd   :  { %1736 = vsyncpa [#allocation8], 1 }
 0x4fe   :  { %1737 = vsyncpa [#allocation11], 1 }
 0x4ff   :  { %1738 = vsyncpa [#allocation14], 1 }
 0x500   :  { %1739 = vsyncpa [#allocation6], 1 }
 0x501   :  { %1741 = vsyncpa [#allocation6 + $0x1], 1 }

</bundles_post_ra>
